<compile_context>
chip_gen: v6e
topology: v6e:2x2x1
jax: 0.10.0
libtpu: 0.0.40
codegen_flags: <defaults>
</compile_context>

<pallas_src>
import numpy as np
import jax
import jax.numpy as jnp
from jax.experimental import pallas as pl
from jax.experimental.pallas import tpu as pltpu

H = 16
W = 16
HW = H * W
NOISE_SCALE = 0.02
# Irwin-Hall(4): sum of 4 iid U[0,1) has mean 2, var 1/3 -> (sum-2)*sqrt(3) ~ N(0,1)
_STD_FIX = float(np.sqrt(3.0))


def _mix32(x):
    """lowbias32-style avalanche finalizer on uint32 (pure VPU integer ops)."""
    x = x ^ (x >> 16)
    x = x * np.uint32(0x7FEB352D)
    x = x ^ (x >> 15)
    x = x * np.uint32(0x846CA68B)
    x = x ^ (x >> 16)
    return x


def ftgan_global_atten_kernel(seed_ref, mean_ref, out_ref):
    # seed_ref: SMEM (1,) int32 (scalar-prefetched)
    # mean_ref: (rows_blk, 1)  f32 -- per-(b, c) style mean in output sublane layout
    # out_ref:  (rows_blk, HW) f32 -- lane-dense flattened (B*C, H*W) tile
    rows_blk, hw = out_ref.shape
    row0 = pl.program_id(0) * rows_blk

    # Global element counter: unique per output element, independent of the tiling,
    # so the bitstream is identical for any grid/block choice.
    rows = jax.lax.broadcasted_iota(jnp.int32, (rows_blk, hw), 0) + row0
    cols = jax.lax.broadcasted_iota(jnp.int32, (rows_blk, hw), 1)
    ctr = (rows * hw + cols).astype(jnp.uint32)
    key = seed_ref[0].astype(jnp.uint32)

    def uniform(k):
        h = _mix32(
            ctr * np.uint32(0x9E3779B1)
            + key * np.uint32(0x85EBCA6B)
            + np.uint32(k) * np.uint32(0xC2B2AE35)
        )
        # Mantissa trick: top 23 hash bits -> float32 in [1, 2) -> [0, 1).
        bits = (h >> 9) | np.uint32(0x3F800000)
        return jax.lax.bitcast_convert_type(bits, jnp.float32) - 1.0

    s = uniform(1) + uniform(2) + uniform(3) + uniform(4)
    noise = (s - 2.0) * np.float32(NOISE_SCALE * _STD_FIX)
    out_ref[...] = mean_ref[...] + noise


def _choose_row_block(rows, row_bytes, target_bytes=3 << 20, min_split_bytes=2 << 20):
    """Largest row-block that is a multiple of 8, divides `rows`, and fits the
    per-buffer VMEM target (double-buffer friendly on v5e/v6e/v7x defaults).
    Only forces >= 2 grid steps when the whole output is big enough that a split
    (v7x's two TensorCores / pipelining) can pay for the per-step overhead."""
    cap = max(8, target_bytes // row_bytes)
    cands = [b for b in range(8, rows + 1, 8) if rows % b == 0 and b <= cap]
    if not cands:
        return rows  # full-extent block is always a legal block shape
    if rows * row_bytes >= min_split_bytes:
        multi = [b for b in cands if rows // b >= 2]
        if multi:
            return max(multi)
    return max(cands)


def ftgan_global_atten(style_features, B, K, ngf, seed=0):
    """style_features: (B*K, ngf*4) float; returns (B, ngf*4, 16, 16) float32.

    The torch.randn noise is produced by a deterministic in-kernel counter-hash
    generator (approximately N(0,1)); same `seed` -> bit-identical output, but
    the bitstream differs from torch.randn (distributional parity only).
    """
    C = ngf * 4
    R = B * C

    # K-mean of the style codes (B*K*C elements -- negligible; computed here so it
    # reaches the kernel sublane-aligned with the output: broadcast == lane splat).
    mean_rows = jnp.mean(
        style_features.reshape(B, K, C).astype(jnp.float32), axis=1
    ).reshape(R, 1)

    # Per-row VMEM per buffer: HW*4 B of output + lane-padded (rows_blk, 1) mean
    # block = 128 lanes * 4 B = 512 B  (perf-review VMEM accounting fix).
    rows_blk = _choose_row_block(R, HW * 4 + 512)
    grid = (R // rows_blk,)
    seed_arr = jnp.asarray([seed], dtype=jnp.int32)

    out_flat = pl.pallas_call(
        ftgan_global_atten_kernel,
        out_shape=jax.ShapeDtypeStruct((R, HW), jnp.float32),
        grid_spec=pltpu.PrefetchScalarGridSpec(
            num_scalar_prefetch=1,
            grid=grid,
            in_specs=[
                pl.BlockSpec((rows_blk, 1), lambda i, seed: (i, 0)),
            ],
            out_specs=pl.BlockSpec((rows_blk, HW), lambda i, seed: (i, 0)),
        ),
        compiler_params=pltpu.CompilerParams(
            dimension_semantics=("parallel",),
        ),
    )(seed_arr, mean_rows)

    # TODO(synk): for tiny B*C (~tens of KiB total) a fused XLA expression would
    # beat the fixed pallas_call overhead; kept on the Pallas path per spec.
    return out_flat.reshape(B, C, H, W)


if __name__ == "__main__":
    # small, module-consistent shapes
    B, K, ngf = 2, 4, 8          # -> C = ngf*4 = 32
    C = ngf * 4

    key = jax.random.PRNGKey(0)
    style_features = jax.random.normal(key, (B * K, C), dtype=jnp.float32)

    out = ftgan_global_atten(style_features, B, K, ngf, seed=0)
    out = jax.block_until_ready(out)
    assert out.shape == (B, C, H, W)
    assert bool(jnp.isfinite(out).all())

    # Deterministic part must match the PyTorch forward exactly: subtracting the
    # broadcast K-mean leaves 0.02 * (in-kernel approximately-standard-normal noise).
    mean_ref = jnp.mean(style_features.reshape(B, K, C), axis=1).reshape(B, C, 1, 1)
    resid = (out - mean_ref) / NOISE_SCALE  # ~N(0, 1), 16384 samples
    assert abs(float(resid.mean())) < 0.05
    assert 0.8 < float(resid.std()) < 1.2

    # Same seed -> bit-identical output (counter-based generator is deterministic).
    out2 = jax.block_until_ready(ftgan_global_atten(style_features, B, K, ngf, seed=0))
    assert bool(jnp.array_equal(out, out2))

    print("KERNEL_OK")
</pallas_src>

<mosaic_0001>
module attributes {stable_mosaic.version = 11 : i64} {
  func.func @ftgan_global_atten_kernel(%arg0: i32, %arg1: memref<1xi32, #tpu.memory_space<smem>>, %arg2: memref<64x1xf32, #tpu.memory_space<vmem>>, %arg3: memref<64x256xf32, #tpu.memory_space<vmem>>) attributes {dimension_semantics = [#tpu.dimension_semantics<parallel>], iteration_bounds = array<i64: 1>, scalar_prefetch = 1 : i64, scratch_operands = 0 : i64, tpu.core_type = #tpu.core_type<tc>, window_params = [{transform_indices = @transform_0, window_bounds = array<i64: 64, 1>}, {transform_indices = @transform_1, window_bounds = array<i64: 64, 256>}]} {
    %c64_i32 = arith.constant 64 : i32
    %0 = arith.muli %arg0, %c64_i32 : i32
    %1 = tpu.iota {dimensions = array<i32: 0>} : vector<64x256xi32>
    %2 = vector.broadcast %0 : i32 to vector<64x256xi32>
    %3 = arith.addi %1, %2 : vector<64x256xi32>
    %4 = tpu.iota {dimensions = array<i32: 1>} : vector<64x256xi32>
    %c256_i32 = arith.constant 256 : i32
    %5 = vector.broadcast %c256_i32 : i32 to vector<64x256xi32>
    %6 = arith.muli %3, %5 : vector<64x256xi32>
    %7 = arith.addi %6, %4 : vector<64x256xi32>
    %c0 = arith.constant 0 : index
    %8 = memref.load %arg1[%c0] : memref<1xi32, #tpu.memory_space<smem>>
    %c-1640531535_i32 = arith.constant -1640531535 : i32
    %9 = vector.broadcast %c-1640531535_i32 : i32 to vector<64x256xi32>
    %10 = arith.muli %7, %9 : vector<64x256xi32>
    %c-2048144789_i32 = arith.constant -2048144789 : i32
    %11 = arith.muli %8, %c-2048144789_i32 : i32
    %12 = vector.broadcast %11 : i32 to vector<64x256xi32>
    %13 = arith.addi %10, %12 : vector<64x256xi32>
    %c-1028477387_i32 = arith.constant -1028477387 : i32
    %14 = vector.broadcast %c-1028477387_i32 : i32 to vector<64x256xi32>
    %15 = arith.addi %13, %14 : vector<64x256xi32>
    %c16_i32 = arith.constant 16 : i32
    %16 = vector.broadcast %c16_i32 : i32 to vector<64x256xi32>
    %17 = arith.shrui %15, %16 : vector<64x256xi32>
    %18 = arith.xori %15, %17 : vector<64x256xi32>
    %c2146121005_i32 = arith.constant 2146121005 : i32
    %19 = vector.broadcast %c2146121005_i32 : i32 to vector<64x256xi32>
    %20 = arith.muli %18, %19 : vector<64x256xi32>
    %c15_i32 = arith.constant 15 : i32
    %21 = vector.broadcast %c15_i32 : i32 to vector<64x256xi32>
    %22 = arith.shrui %20, %21 : vector<64x256xi32>
    %23 = arith.xori %20, %22 : vector<64x256xi32>
    %c-2073254261_i32 = arith.constant -2073254261 : i32
    %24 = vector.broadcast %c-2073254261_i32 : i32 to vector<64x256xi32>
    %25 = arith.muli %23, %24 : vector<64x256xi32>
    %c16_i32_0 = arith.constant 16 : i32
    %26 = vector.broadcast %c16_i32_0 : i32 to vector<64x256xi32>
    %27 = arith.shrui %25, %26 : vector<64x256xi32>
    %28 = arith.xori %25, %27 : vector<64x256xi32>
    %c9_i32 = arith.constant 9 : i32
    %29 = vector.broadcast %c9_i32 : i32 to vector<64x256xi32>
    %30 = arith.shrui %28, %29 : vector<64x256xi32>
    %c1065353216_i32 = arith.constant 1065353216 : i32
    %31 = vector.broadcast %c1065353216_i32 : i32 to vector<64x256xi32>
    %32 = arith.ori %30, %31 : vector<64x256xi32>
    %33 = tpu.bitcast %32 : vector<64x256xi32> -> vector<64x256xf32>
    %cst = arith.constant 1.000000e+00 : f32
    %34 = vector.broadcast %cst : f32 to vector<64x256xf32>
    %35 = arith.subf %33, %34 : vector<64x256xf32>
    %c-1640531535_i32_1 = arith.constant -1640531535 : i32
    %36 = vector.broadcast %c-1640531535_i32_1 : i32 to vector<64x256xi32>
    %37 = arith.muli %7, %36 : vector<64x256xi32>
    %c-2048144789_i32_2 = arith.constant -2048144789 : i32
    %38 = arith.muli %8, %c-2048144789_i32_2 : i32
    %39 = vector.broadcast %38 : i32 to vector<64x256xi32>
    %40 = arith.addi %37, %39 : vector<64x256xi32>
    %c-2056954774_i32 = arith.constant -2056954774 : i32
    %41 = vector.broadcast %c-2056954774_i32 : i32 to vector<64x256xi32>
    %42 = arith.addi %40, %41 : vector<64x256xi32>
    %c16_i32_3 = arith.constant 16 : i32
    %43 = vector.broadcast %c16_i32_3 : i32 to vector<64x256xi32>
    %44 = arith.shrui %42, %43 : vector<64x256xi32>
    %45 = arith.xori %42, %44 : vector<64x256xi32>
    %c2146121005_i32_4 = arith.constant 2146121005 : i32
    %46 = vector.broadcast %c2146121005_i32_4 : i32 to vector<64x256xi32>
    %47 = arith.muli %45, %46 : vector<64x256xi32>
    %c15_i32_5 = arith.constant 15 : i32
    %48 = vector.broadcast %c15_i32_5 : i32 to vector<64x256xi32>
    %49 = arith.shrui %47, %48 : vector<64x256xi32>
    %50 = arith.xori %47, %49 : vector<64x256xi32>
    %c-2073254261_i32_6 = arith.constant -2073254261 : i32
    %51 = vector.broadcast %c-2073254261_i32_6 : i32 to vector<64x256xi32>
    %52 = arith.muli %50, %51 : vector<64x256xi32>
    %c16_i32_7 = arith.constant 16 : i32
    %53 = vector.broadcast %c16_i32_7 : i32 to vector<64x256xi32>
    %54 = arith.shrui %52, %53 : vector<64x256xi32>
    %55 = arith.xori %52, %54 : vector<64x256xi32>
    %c9_i32_8 = arith.constant 9 : i32
    %56 = vector.broadcast %c9_i32_8 : i32 to vector<64x256xi32>
    %57 = arith.shrui %55, %56 : vector<64x256xi32>
    %c1065353216_i32_9 = arith.constant 1065353216 : i32
    %58 = vector.broadcast %c1065353216_i32_9 : i32 to vector<64x256xi32>
    %59 = arith.ori %57, %58 : vector<64x256xi32>
    %60 = tpu.bitcast %59 : vector<64x256xi32> -> vector<64x256xf32>
    %cst_10 = arith.constant 1.000000e+00 : f32
    %61 = vector.broadcast %cst_10 : f32 to vector<64x256xf32>
    %62 = arith.subf %60, %61 : vector<64x256xf32>
    %63 = arith.addf %35, %62 : vector<64x256xf32>
    %c-1640531535_i32_11 = arith.constant -1640531535 : i32
    %64 = vector.broadcast %c-1640531535_i32_11 : i32 to vector<64x256xi32>
    %65 = arith.muli %7, %64 : vector<64x256xi32>
    %c-2048144789_i32_12 = arith.constant -2048144789 : i32
    %66 = arith.muli %8, %c-2048144789_i32_12 : i32
    %67 = vector.broadcast %66 : i32 to vector<64x256xi32>
    %68 = arith.addi %65, %67 : vector<64x256xi32>
    %c1209535135_i32 = arith.constant 1209535135 : i32
    %69 = vector.broadcast %c1209535135_i32 : i32 to vector<64x256xi32>
    %70 = arith.addi %68, %69 : vector<64x256xi32>
    %c16_i32_13 = arith.constant 16 : i32
    %71 = vector.broadcast %c16_i32_13 : i32 to vector<64x256xi32>
    %72 = arith.shrui %70, %71 : vector<64x256xi32>
    %73 = arith.xori %70, %72 : vector<64x256xi32>
    %c2146121005_i32_14 = arith.constant 2146121005 : i32
    %74 = vector.broadcast %c2146121005_i32_14 : i32 to vector<64x256xi32>
    %75 = arith.muli %73, %74 : vector<64x256xi32>
    %c15_i32_15 = arith.constant 15 : i32
    %76 = vector.broadcast %c15_i32_15 : i32 to vector<64x256xi32>
    %77 = arith.shrui %75, %76 : vector<64x256xi32>
    %78 = arith.xori %75, %77 : vector<64x256xi32>
    %c-2073254261_i32_16 = arith.constant -2073254261 : i32
    %79 = vector.broadcast %c-2073254261_i32_16 : i32 to vector<64x256xi32>
    %80 = arith.muli %78, %79 : vector<64x256xi32>
    %c16_i32_17 = arith.constant 16 : i32
    %81 = vector.broadcast %c16_i32_17 : i32 to vector<64x256xi32>
    %82 = arith.shrui %80, %81 : vector<64x256xi32>
    %83 = arith.xori %80, %82 : vector<64x256xi32>
    %c9_i32_18 = arith.constant 9 : i32
    %84 = vector.broadcast %c9_i32_18 : i32 to vector<64x256xi32>
    %85 = arith.shrui %83, %84 : vector<64x256xi32>
    %c1065353216_i32_19 = arith.constant 1065353216 : i32
    %86 = vector.broadcast %c1065353216_i32_19 : i32 to vector<64x256xi32>
    %87 = arith.ori %85, %86 : vector<64x256xi32>
    %88 = tpu.bitcast %87 : vector<64x256xi32> -> vector<64x256xf32>
    %cst_20 = arith.constant 1.000000e+00 : f32
    %89 = vector.broadcast %cst_20 : f32 to vector<64x256xf32>
    %90 = arith.subf %88, %89 : vector<64x256xf32>
    %91 = arith.addf %63, %90 : vector<64x256xf32>
    %c-1640531535_i32_21 = arith.constant -1640531535 : i32
    %92 = vector.broadcast %c-1640531535_i32_21 : i32 to vector<64x256xi32>
    %93 = arith.muli %7, %92 : vector<64x256xi32>
    %c-2048144789_i32_22 = arith.constant -2048144789 : i32
    %94 = arith.muli %8, %c-2048144789_i32_22 : i32
    %95 = vector.broadcast %94 : i32 to vector<64x256xi32>
    %96 = arith.addi %93, %95 : vector<64x256xi32>
    %c181057748_i32 = arith.constant 181057748 : i32
    %97 = vector.broadcast %c181057748_i32 : i32 to vector<64x256xi32>
    %98 = arith.addi %96, %97 : vector<64x256xi32>
    %c16_i32_23 = arith.constant 16 : i32
    %99 = vector.broadcast %c16_i32_23 : i32 to vector<64x256xi32>
    %100 = arith.shrui %98, %99 : vector<64x256xi32>
    %101 = arith.xori %98, %100 : vector<64x256xi32>
    %c2146121005_i32_24 = arith.constant 2146121005 : i32
    %102 = vector.broadcast %c2146121005_i32_24 : i32 to vector<64x256xi32>
    %103 = arith.muli %101, %102 : vector<64x256xi32>
    %c15_i32_25 = arith.constant 15 : i32
    %104 = vector.broadcast %c15_i32_25 : i32 to vector<64x256xi32>
    %105 = arith.shrui %103, %104 : vector<64x256xi32>
    %106 = arith.xori %103, %105 : vector<64x256xi32>
    %c-2073254261_i32_26 = arith.constant -2073254261 : i32
    %107 = vector.broadcast %c-2073254261_i32_26 : i32 to vector<64x256xi32>
    %108 = arith.muli %106, %107 : vector<64x256xi32>
    %c16_i32_27 = arith.constant 16 : i32
    %109 = vector.broadcast %c16_i32_27 : i32 to vector<64x256xi32>
    %110 = arith.shrui %108, %109 : vector<64x256xi32>
    %111 = arith.xori %108, %110 : vector<64x256xi32>
    %c9_i32_28 = arith.constant 9 : i32
    %112 = vector.broadcast %c9_i32_28 : i32 to vector<64x256xi32>
    %113 = arith.shrui %111, %112 : vector<64x256xi32>
    %c1065353216_i32_29 = arith.constant 1065353216 : i32
    %114 = vector.broadcast %c1065353216_i32_29 : i32 to vector<64x256xi32>
    %115 = arith.ori %113, %114 : vector<64x256xi32>
    %116 = tpu.bitcast %115 : vector<64x256xi32> -> vector<64x256xf32>
    %cst_30 = arith.constant 1.000000e+00 : f32
    %117 = vector.broadcast %cst_30 : f32 to vector<64x256xf32>
    %118 = arith.subf %116, %117 : vector<64x256xf32>
    %119 = arith.addf %91, %118 : vector<64x256xf32>
    %cst_31 = arith.constant 2.000000e+00 : f32
    %120 = vector.broadcast %cst_31 : f32 to vector<64x256xf32>
    %121 = arith.subf %119, %120 : vector<64x256xf32>
    %cst_32 = arith.constant 0.0346410163 : f32
    %122 = vector.broadcast %cst_32 : f32 to vector<64x256xf32>
    %123 = arith.mulf %121, %122 : vector<64x256xf32>
    %c0_33 = arith.constant 0 : index
    %c0_34 = arith.constant 0 : index
    %124 = vector.load %arg2[%c0_33, %c0_34] : memref<64x1xf32, #tpu.memory_space<vmem>>, vector<64x1xf32>
    %125 = vector.broadcast %124 : vector<64x1xf32> to vector<64x256xf32>
    %126 = arith.addf %125, %123 : vector<64x256xf32>
    %c0_35 = arith.constant 0 : index
    %c0_36 = arith.constant 0 : index
    %127 = vector.load %arg3[%c0_35, %c0_36] : memref<64x256xf32, #tpu.memory_space<vmem>>, vector<64x256xf32>
    tpu.vector_store %arg3[%c0_35, %c0_36], %126 {strides = array<i32>} : memref<64x256xf32, #tpu.memory_space<vmem>>, vector<64x256xf32>,
    return
  }
  func.func @transform_0(%arg0: i32, %arg1: memref<1xi32, #tpu.memory_space<smem>>) -> (i32, i32) {
    %c0_i32 = arith.constant 0 : i32
    %c0_i32_0 = arith.constant 0 : i32
    return %arg0, %c0_i32 : i32, i32
  }
  func.func @transform_1(%arg0: i32, %arg1: memref<1xi32, #tpu.memory_space<smem>>) -> (i32, i32) {
    %c0_i32 = arith.constant 0 : i32
    %c0_i32_0 = arith.constant 0 : i32
    return %arg0, %c0_i32 : i32, i32
  }
}

</mosaic_0001>

<bundles_post_ra>
// kernel: tpu_custom_call.1
= control target key start
LH: loop header
LB: loop body
LE: loop exit
PB: predicated region body
PF: predicated region fallthrough
CT: control target
= control target key end

     0   :  { %v12_v2 = vlaneseq  ;;  %v1208_v3 = vmov 0   ;;  %s1470_s0 = inlined_call_operand.<no memory space> [shape: s32[1], index: 0, kind: input, shape index: {}]   ;;  %s1471_s1 = inlined_call_operand.vmem [shape: f32[64,1], index: 1, kind: input, shape index: {}]   ;;  %s1472_s2 = inlined_call_operand.hbm [shape: f32[64,256], index: 2, kind: output, shape index: {}]  }
   0x1   :  { %v1006_v0 = vld [vmem:[%s1471_s1 + $0x10] sm:$0xff]  ;;  %v1004_v1 = vld [vmem:[%s1471_s1] sm:$0xff]  ;;  %1185 = vset.pattern.permute.xlu1 %v1208_v3  ;;  %1184 = vset.pattern.permute.xlu0 %v1208_v3 }
   0x2   :  { %1024 = vperm.xlu1 %1185, %v1006_v0   ;;  %1014 = vperm.xlu0 %1184, %v1004_v1   ;;  %v1233_v4 = vshrl.u32 %v12_v2, 7  ;;  %v1235_v5 = vand.u32 127, %v12_v2 }
   0x3   :  { %8 = vsyncpa [#allocation5], 0  ;;  %v1007_v6 = vld [vmem:[%s1471_s1 + $0x18] sm:$0xff]  ;;  %v1005_v7 = vld [vmem:[%s1471_s1 + $0x8] sm:$0xff]  ;;  %s74_s19 = smul.u32 2246822507, %s1470_s0 }
   0x4   :  { %v15_v8 = vadd.s32 16, %v1233_v4  ;;  %v1248_v9 = vadd.s32 128, %v1235_v5  ;;  %v33_v10 = vmul.u32 256, %v1233_v4  ;;  %v16_v11 = vadd.s32 24, %v1233_v4  ;;  %v1009_v18 = vld [vmem:[%s1471_s1 + $0x28] sm:$0xff]  ;;  %v1008_v19 = vld [vmem:[%s1471_s1 + $0x20] sm:$0xff] }
   0x5   :  { %v14_v12 = vadd.s32 8, %v1233_v4  ;;  %v1254_v13 = vadd.s32 40, %v1233_v4  ;;  %v1264_v20 = vstv %s74_s19  ;;  %v1011_v29 = vld [vmem:[%s1471_s1 + $0x38] sm:$0xff]  ;;  %v1010_v34 = vld [vmem:[%s1471_s1 + $0x30] sm:$0xff]  ;;  %v1290_v38 = vadd.s32 32, %v1233_v4  ;;  %s1209_s1 = smov [#allocation4]  }
   0x6   :  { %1029 = vperm.xlu1 %1185, %v1007_v6   ;;  %1019 = vperm.xlu0 %1184, %v1005_v7   ;;  %v35_v14 = vmul.u32 256, %v15_v8  ;;  %v41_v15 = vadd.s32 %v33_v10, %v1235_v5  ;;  %v42_v16 = vadd.s32 %v33_v10, %v1248_v9  ;;  %v36_v17 = vmul.u32 256, %v16_v11  ;;  %s1089_s27 = sshll.u32 %s1209_s1, 4  ;;  %s1090_s27 = int_to_ptr.vmem [resolvable:$true] %s1089_s27 }
   0x7   :  { %v34_v21 = vmul.u32 256, %v14_v12  ;;  %v38_v28 = vmul.u32 256, %v1254_v13  ;;  %s1186_s28 = scalar_lea.vmem %s1090_s27, 2048  ;;  %p1191_p1 = scmp.lt.s32.totalorder %s1090_s27, %s1090_s27 }
   0x8   :  { %v45_v22 = vadd.s32 %v35_v14, %v1235_v5  ;;  %v46_v23 = vadd.s32 %v35_v14, %v1248_v9  ;;  %v58_v24 = vmul.u32 2654435761, %v41_v15  ;;  %v59_v25 = vmul.u32 2654435761, %v42_v16  ;;  %p1187_p0 = scmp.ne.s32.totalorder %s1090_s27, %s1186_s28  ;;  %p1192_p2 = scmp.lt.s32.totalorder %s1186_s28, %s1186_s28 }
   0x9   :  { %v47_v26 = vadd.s32 %v36_v17, %v1235_v5  ;;  %v1270_v27 = vadd.s32 %v36_v17, %v1248_v9  ;;  %v1287_v37 = vadd.s32 %v34_v21, %v1235_v5  ;;  %v1310_v46 = vadd.s32 %v34_v21, %v1248_v9 }
   0xa   :  { %1039 = vperm.xlu1 %1185, %v1009_v18   ;;  %1034 = vperm.xlu0 %1184, %v1008_v19   ;;  %v62_v30 = vmul.u32 2654435761, %v45_v22  ;;  %v63_v31 = vmul.u32 2654435761, %v46_v23  ;;  %v1277_v32 = vadd.s32 %v1264_v20, %v58_v24  ;;  %v1280_v33 = vadd.s32 %v1264_v20, %v59_v25  ;;  %p1193_p3 = por %p1192_p2, %p1191_p1 }
   0xb   :  { %v64_v35 = vmul.u32 2654435761, %v47_v26  ;;  %v65_v36 = vmul.u32 2654435761, %v1270_v27  ;;  %v1315_v50 = vadd.s32 %v38_v28, %v1235_v5 }
   0xc   :  { %v80_v39 = vadd.s32 %v1264_v20, %v62_v30  ;;  %v81_v40 = vadd.s32 %v1264_v20, %v63_v31  ;;  %v1295_v41 = vadd.s32 3266489909, %v1277_v32  ;;  %v1298_v42 = vadd.s32 3266489909, %v1280_v33  ;;  %p1194_p4 = pnand %p1193_p3, %p1187_p0 }
   0xd   :  { %v1301_v43 = vadd.s32 2238012522, %v1277_v32  ;;  %v1304_v44 = vadd.s32 2238012522, %v1280_v33  ;;  %v1307_v45 = vadd.s32 1209535135, %v1277_v32  ;;  %v1318_v54 = vadd.s32 %v1264_v20, %v64_v35 }
   0xe   :  { %1049 = vperm.xlu1 %1185, %v1011_v29   ;;  %1044 = vperm.xlu0 %1184, %v1010_v34   ;;  %v96_v47 = vadd.s32 3266489909, %v80_v39  ;;  %v97_v48 = vadd.s32 3266489909, %v81_v40  ;;  %v304_v49 = vadd.s32 2238012522, %v80_v39 }
   0xf   :  { %v305_v51 = vadd.s32 2238012522, %v81_v40  ;;  %v528_v52 = vadd.s32 1209535135, %v80_v39  ;;  %v529_v53 = vadd.s32 1209535135, %v81_v40 }
  0x10   :  { %v112_v55 = vshrl.u32 %v96_v47, 16  ;;  %v113_v56 = vshrl.u32 %v97_v48, 16  ;;  %v320_v57 = vshrl.u32 %v304_v49, 16  ;;  %v752_v58 = vadd.s32 181057748, %v80_v39 }
  0x11   :  { %v321_v59 = vshrl.u32 %v305_v51, 16  ;;  %v544_v60 = vshrl.u32 %v528_v52, 16  ;;  %v545_v61 = vshrl.u32 %v529_v53, 16  ;;  %v753_v62 = vadd.s32 181057748, %v81_v40 }
  0x12   :  { %v128_v63 = vxor.u32 %v112_v55, %v96_v47  ;;  %v129_v0 = vxor.u32 %v113_v56, %v97_v48  ;;  %v336_v1 = vxor.u32 %v320_v57, %v304_v49  ;;  %v768_v2 = vshrl.u32 %v752_v58, 16 }
  0x13   :  { %v337_v3 = vxor.u32 %v321_v59, %v305_v51  ;;  %v560_v6 = vxor.u32 %v544_v60, %v528_v52  ;;  %v561_v7 = vxor.u32 %v545_v61, %v529_v53  ;;  %v769_v8 = vshrl.u32 %v753_v62, 16 }
  0x14   :  { %v144_v10 = vmul.u32 2146121005, %v128_v63  ;;  %v145_v11 = vmul.u32 2146121005, %v129_v0  ;;  %v784_v12 = vxor.u32 %v768_v2, %v752_v58  ;;  %v108_v14 = vshrl.u32 %v1295_v41, 16 }
  0x15   :  { %v352_v15 = vmul.u32 2146121005, %v336_v1  ;;  %v353_v16 = vmul.u32 2146121005, %v337_v3  ;;  %v785_v17 = vxor.u32 %v769_v8, %v753_v62  ;;  %v109_v18 = vshrl.u32 %v1298_v42, 16 }
  0x16   :  { %v160_v19 = vshrl.u32 %v144_v10, 15  ;;  %v161_v21 = vshrl.u32 %v145_v11, 15  ;;  %v576_v22 = vmul.u32 2146121005, %v560_v6  ;;  %v577_v23 = vmul.u32 2146121005, %v561_v7 }
  0x17   :  { %v368_v24 = vshrl.u32 %v352_v15, 15  ;;  %v369_v25 = vshrl.u32 %v353_v16, 15  ;;  %v800_v26 = vmul.u32 2146121005, %v784_v12  ;;  %v801_v29 = vmul.u32 2146121005, %v785_v17 }
  0x18   :  { %v176_v30 = vxor.u32 %v160_v19, %v144_v10  ;;  %v177_v31 = vxor.u32 %v161_v21, %v145_v11  ;;  %v592_v34 = vshrl.u32 %v576_v22, 15  ;;  %v593_v35 = vshrl.u32 %v577_v23, 15 }
  0x19   :  { %v384_v39 = vxor.u32 %v368_v24, %v352_v15  ;;  %v385_v40 = vxor.u32 %v369_v25, %v353_v16  ;;  %v816_v47 = vshrl.u32 %v800_v26, 15  ;;  %v817_v48 = vshrl.u32 %v801_v29, 15 }
  0x1a   :  { %v192_v49 = vmul.u32 2221713035, %v176_v30  ;;  %v193_v51 = vmul.u32 2221713035, %v177_v31  ;;  %v608_v52 = vxor.u32 %v592_v34, %v576_v22  ;;  %v609_v53 = vxor.u32 %v593_v35, %v577_v23 }
  0x1b   :  { %v400_v55 = vmul.u32 2221713035, %v384_v39  ;;  %v401_v56 = vmul.u32 2221713035, %v385_v40  ;;  %v832_v57 = vxor.u32 %v816_v47, %v800_v26  ;;  %v833_v58 = vxor.u32 %v817_v48, %v801_v29 }
  0x1c   :  { %v208_v59 = vshrl.u32 %v192_v49, 16  ;;  %v209_v60 = vshrl.u32 %v193_v51, 16  ;;  %v624_v61 = vmul.u32 2221713035, %v608_v52  ;;  %v625_v62 = vmul.u32 2221713035, %v609_v53 }
  0x1d   :  { %v416_v63 = vshrl.u32 %v400_v55, 16  ;;  %v417_v0 = vshrl.u32 %v401_v56, 16  ;;  %v848_v1 = vmul.u32 2221713035, %v832_v57  ;;  %v849_v2 = vmul.u32 2221713035, %v833_v58 }
  0x1e   :  { %v224_v3 = vxor.u32 %v208_v59, %v192_v49  ;;  %v225_v6 = vxor.u32 %v209_v60, %v193_v51  ;;  %v640_v7 = vshrl.u32 %v624_v61, 16  ;;  %v641_v8 = vshrl.u32 %v625_v62, 16 }
  0x1f   :  { %v432_v10 = vxor.u32 %v416_v63, %v400_v55  ;;  %v433_v11 = vxor.u32 %v417_v0, %v401_v56  ;;  %v864_v12 = vshrl.u32 %v848_v1, 16  ;;  %v865_v15 = vshrl.u32 %v849_v2, 16 }
  0x20   :  { %v240_v16 = vshrl.u32 %v224_v3, 9  ;;  %v241_v17 = vshrl.u32 %v225_v6, 9  ;;  %v656_v19 = vxor.u32 %v640_v7, %v624_v61  ;;  %v657_v21 = vxor.u32 %v641_v8, %v625_v62 }
  0x21   :  { %v448_v22 = vshrl.u32 %v432_v10, 9  ;;  %v449_v23 = vshrl.u32 %v433_v11, 9  ;;  %v880_v24 = vxor.u32 %v864_v12, %v848_v1  ;;  %v881_v25 = vxor.u32 %v865_v15, %v849_v2 }
  0x22   :  { %v256_v26 = vor.u32 1065353216, %v240_v16  ;;  %v257_v29 = vor.u32 1065353216, %v241_v17  ;;  %v672_v30 = vshrl.u32 %v656_v19, 9  ;;  %v673_v31 = vshrl.u32 %v657_v21, 9 }
  0x23   :  { %v464_v34 = vor.u32 1065353216, %v448_v22  ;;  %v465_v35 = vor.u32 1065353216, %v449_v23  ;;  %v896_v39 = vshrl.u32 %v880_v24, 9  ;;  %v897_v40 = vshrl.u32 %v881_v25, 9 }
  0x24   :  { %v1104_v47 = vadd.f32 -1.0, %v256_v26  ;;  %v1105_v48 = vadd.f32 -1.0, %v257_v29  ;;  %v688_v49 = vor.u32 1065353216, %v672_v30  ;;  %v689_v51 = vor.u32 1065353216, %v673_v31 }
  0x25   :  { %v1120_v52 = vadd.f32 -1.0, %v464_v34  ;;  %v1121_v53 = vadd.f32 -1.0, %v465_v35  ;;  %v912_v55 = vor.u32 1065353216, %v896_v39  ;;  %v913_v56 = vor.u32 1065353216, %v897_v40 }
  0x26   :  { %v1136_v57 = vadd.f32 -1.0, %v688_v49  ;;  %v1137_v58 = vadd.f32 -1.0, %v689_v51  ;;  %v124_v59 = vxor.u32 %v108_v14, %v1295_v41  ;;  %v125_v60 = vxor.u32 %v109_v18, %v1298_v42 }
  0x27   :  { %v512_v61 = vadd.f32 %v1120_v52, %v1104_v47  ;;  %v513_v62 = vadd.f32 %v1121_v53, %v1105_v48  ;;  %v1152_v63 = vadd.f32 -1.0, %v912_v55  ;;  %v1153_v0 = vadd.f32 -1.0, %v913_v56 }
  0x28   :  { %v140_v1 = vmul.u32 2146121005, %v124_v59  ;;  %v141_v2 = vmul.u32 2146121005, %v125_v60  ;;  %v316_v3 = vshrl.u32 %v1301_v43, 16  ;;  %v317_v6 = vshrl.u32 %v1304_v44, 16 }
  0x29   :  { %v736_v7 = vadd.f32 %v1136_v57, %v512_v61  ;;  %v737_v8 = vadd.f32 %v1137_v58, %v513_v62  ;;  %v525_v10 = vadd.s32 1209535135, %v1280_v33  ;;  %v540_v41 = vshrl.u32 %v1307_v45, 16 }
  0x2a   :  { %v156_v14 = vshrl.u32 %v140_v1, 15  ;;  %v157_v11 = vshrl.u32 %v141_v2, 15  ;;  %v332_v42 = vxor.u32 %v316_v3, %v1301_v43  ;;  %v333_v18 = vxor.u32 %v317_v6, %v1304_v44 }
  0x2b   :  { %v960_v12 = vadd.f32 %v1152_v63, %v736_v7  ;;  %v961_v15 = vadd.f32 %v1153_v0, %v737_v8  ;;  %v541_v16 = vshrl.u32 %v525_v10, 16  ;;  %v556_v17 = vxor.u32 %v540_v41, %v1307_v45 }
  0x2c   :  { %v172_v19 = vxor.u32 %v156_v14, %v140_v1  ;;  %v173_v21 = vxor.u32 %v157_v11, %v141_v2  ;;  %v348_v22 = vmul.u32 2146121005, %v332_v42  ;;  %v349_v23 = vmul.u32 2146121005, %v333_v18 }
  0x2d   :  { %v1168_v24 = vadd.f32 -2.0, %v960_v12  ;;  %v1169_v25 = vadd.f32 -2.0, %v961_v15  ;;  %v557_v26 = vxor.u32 %v541_v16, %v525_v10  ;;  %v572_v29 = vmul.u32 2146121005, %v556_v17 }
  0x2e   :  { %v188_v30 = vmul.u32 2221713035, %v172_v19  ;;  %v189_v31 = vmul.u32 2221713035, %v173_v21  ;;  %v364_v34 = vshrl.u32 %v348_v22, 15  ;;  %v365_v35 = vshrl.u32 %v349_v23, 15 }
  0x2f   :  { %v1335_v43 = vmul.f32 0.034641016, %v1168_v24  ;;  %v1337_v44 = vmul.f32 0.034641016, %v1169_v25  ;;  %v573_v39 = vmul.u32 2146121005, %v557_v26  ;;  %v1342_v45 = vadd.s32 %v1264_v20, %v65_v36 }
  0x30   :  { %v204_v40 = vshrl.u32 %v188_v30, 16  ;;  %v205_v47 = vshrl.u32 %v189_v31, 16  ;;  %v380_v48 = vxor.u32 %v364_v34, %v348_v22  ;;  %v381_v49 = vxor.u32 %v365_v35, %v349_v23 }
  0x31   :  { %v588_v51 = vshrl.u32 %v572_v29, 15  ;;  %v589_v52 = vshrl.u32 %v573_v39, 15  ;;  %v748_v53 = vadd.s32 181057748, %v1277_v32  ;;  %v749_v55 = vadd.s32 181057748, %v1280_v33 }
  0x32   :  { %v220_v56 = vxor.u32 %v204_v40, %v188_v30  ;;  %v221_v57 = vxor.u32 %v205_v47, %v189_v31  ;;  %v396_v58 = vmul.u32 2221713035, %v380_v48  ;;  %v397_v59 = vmul.u32 2221713035, %v381_v49 }
  0x33   :  { %v604_v60 = vxor.u32 %v588_v51, %v572_v29  ;;  %v605_v61 = vxor.u32 %v589_v52, %v573_v39  ;;  %v764_v27 = vshrl.u32 %v748_v53, 16  ;;  %v765_v62 = vshrl.u32 %v749_v55, 16 }
  0x34   :  { %v236_v36 = vshrl.u32 %v220_v56, 9  ;;  %v237_v63 = vshrl.u32 %v221_v57, 9  ;;  %v412_v0 = vshrl.u32 %v396_v58, 16  ;;  %v413_v1 = vshrl.u32 %v397_v59, 16 }
  0x35   :  { %v620_v2 = vmul.u32 2221713035, %v604_v60  ;;  %v621_v3 = vmul.u32 2221713035, %v605_v61  ;;  %v780_v6 = vxor.u32 %v764_v27, %v748_v53  ;;  %v781_v7 = vxor.u32 %v765_v62, %v749_v55 }
  0x36   :  { %v252_v8 = vor.u32 1065353216, %v236_v36  ;;  %v253_v32 = vor.u32 1065353216, %v237_v63  ;;  %v428_v10 = vxor.u32 %v412_v0, %v396_v58  ;;  %v429_v33 = vxor.u32 %v413_v1, %v397_v59 }
  0x37   :  { %v636_v41 = vshrl.u32 %v620_v2, 16  ;;  %v637_v14 = vshrl.u32 %v621_v3, 16  ;;  %v796_v11 = vmul.u32 2146121005, %v780_v6  ;;  %v797_v42 = vmul.u32 2146121005, %v781_v7 }
  0x38   :  { %v1100_v18 = vadd.f32 -1.0, %v252_v8  ;;  %v1101_v12 = vadd.f32 -1.0, %v253_v32  ;;  %v444_v15 = vshrl.u32 %v428_v10, 9  ;;  %v445_v16 = vshrl.u32 %v429_v33, 9 }
  0x39   :  { %v652_v17 = vxor.u32 %v636_v41, %v620_v2  ;;  %v653_v19 = vxor.u32 %v637_v14, %v621_v3  ;;  %v812_v21 = vshrl.u32 %v796_v11, 15  ;;  %v813_v22 = vshrl.u32 %v797_v42, 15 }
  0x3a   :  { %v460_v23 = vor.u32 1065353216, %v444_v15  ;;  %v461_v24 = vor.u32 1065353216, %v445_v16  ;;  %v98_v25 = vadd.s32 3266489909, %v1318_v54  ;;  %v99_v26 = vadd.s32 3266489909, %v1342_v45 }
  0x3b   :  { %v668_v29 = vshrl.u32 %v652_v17, 9  ;;  %v669_v30 = vshrl.u32 %v653_v19, 9  ;;  %v828_v31 = vxor.u32 %v812_v21, %v796_v11  ;;  %v829_v34 = vxor.u32 %v813_v22, %v797_v42 }
  0x3c   :  { %v1116_v35 = vadd.f32 -1.0, %v460_v23  ;;  %v1117_v39 = vadd.f32 -1.0, %v461_v24  ;;  %v114_v40 = vshrl.u32 %v98_v25, 16  ;;  %v115_v47 = vshrl.u32 %v99_v26, 16 }
  0x3d   :  { %v684_v48 = vor.u32 1065353216, %v668_v29  ;;  %v685_v49 = vor.u32 1065353216, %v669_v30  ;;  %v844_v51 = vmul.u32 2221713035, %v828_v31  ;;  %v845_v52 = vmul.u32 2221713035, %v829_v34 }
  0x3e   :  { %v508_v53 = vadd.f32 %v1116_v35, %v1100_v18  ;;  %v509_v55 = vadd.f32 %v1117_v39, %v1101_v12  ;;  %v130_v56 = vxor.u32 %v114_v40, %v98_v25  ;;  %v131_v57 = vxor.u32 %v115_v47, %v99_v26 }
  0x3f   :  { %v1132_v58 = vadd.f32 -1.0, %v684_v48  ;;  %v1133_v59 = vadd.f32 -1.0, %v685_v49  ;;  %v860_v60 = vshrl.u32 %v844_v51, 16  ;;  %v861_v61 = vshrl.u32 %v845_v52, 16 }
  0x40   :  { %v146_v27 = vmul.u32 2146121005, %v130_v56  ;;  %v147_v62 = vmul.u32 2146121005, %v131_v57  ;;  %v306_v36 = vadd.s32 2238012522, %v1318_v54  ;;  %v1352_v63 = vadd.s32 %v38_v28, %v1248_v9 }
  0x41   :  { %v732_v0 = vadd.f32 %v1132_v58, %v508_v53  ;;  %v733_v1 = vadd.f32 %v1133_v59, %v509_v55  ;;  %v876_v2 = vxor.u32 %v860_v60, %v844_v51  ;;  %v877_v3 = vxor.u32 %v861_v61, %v845_v52 }
  0x42   :  { %v162_v6 = vshrl.u32 %v146_v27, 15  ;;  %v163_v7 = vshrl.u32 %v147_v62, 15  ;;  %v307_v8 = vadd.s32 2238012522, %v1342_v45  ;;  %v322_v32 = vshrl.u32 %v306_v36, 16 }
  0x43   :  { %v892_v10 = vshrl.u32 %v876_v2, 9  ;;  %v893_v33 = vshrl.u32 %v877_v3, 9  ;;  %v530_v41 = vadd.s32 1209535135, %v1318_v54  ;;  %v531_v14 = vadd.s32 1209535135, %v1342_v45 }
  0x44   :  { %v178_v11 = vxor.u32 %v162_v6, %v146_v27  ;;  %v179_v42 = vxor.u32 %v163_v7, %v147_v62  ;;  %v323_v13 = vshrl.u32 %v307_v8, 16  ;;  %v338_v28 = vxor.u32 %v322_v32, %v306_v36 }
  0x45   :  { %v908_v18 = vor.u32 1065353216, %v892_v10  ;;  %v909_v12 = vor.u32 1065353216, %v893_v33  ;;  %v546_v15 = vshrl.u32 %v530_v41, 16  ;;  %v547_v16 = vshrl.u32 %v531_v14, 16 }
  0x46   :  { %v194_v17 = vmul.u32 2221713035, %v178_v11  ;;  %v195_v19 = vmul.u32 2221713035, %v179_v42  ;;  %v339_v21 = vxor.u32 %v323_v13, %v307_v8  ;;  %v754_v22 = vadd.s32 181057748, %v1318_v54 }
  0x47   :  { %v1148_v23 = vadd.f32 -1.0, %v908_v18  ;;  %v1149_v24 = vadd.f32 -1.0, %v909_v12  ;;  %v354_v25 = vmul.u32 2146121005, %v338_v28  ;;  %v562_v26 = vxor.u32 %v546_v15, %v530_v41 }
  0x48   :  { %v210_v29 = vshrl.u32 %v194_v17, 16  ;;  %v211_v30 = vshrl.u32 %v195_v19, 16  ;;  %v355_v31 = vmul.u32 2146121005, %v339_v21  ;;  %v563_v34 = vxor.u32 %v547_v16, %v531_v14 }
  0x49   :  { %v956_v35 = vadd.f32 %v1148_v23, %v732_v0  ;;  %v957_v39 = vadd.f32 %v1149_v24, %v733_v1  ;;  %v370_v40 = vshrl.u32 %v354_v25, 15  ;;  %v578_v47 = vmul.u32 2146121005, %v562_v26 }
  0x4a   :  { %v226_v48 = vxor.u32 %v210_v29, %v194_v17  ;;  %v227_v49 = vxor.u32 %v211_v30, %v195_v19  ;;  %v371_v51 = vshrl.u32 %v355_v31, 15  ;;  %v579_v52 = vmul.u32 2146121005, %v563_v34 }
  0x4b   :  { %v1164_v53 = vadd.f32 -2.0, %v956_v35  ;;  %v1165_v55 = vadd.f32 -2.0, %v957_v39  ;;  %v386_v56 = vxor.u32 %v370_v40, %v354_v25  ;;  %v594_v54 = vshrl.u32 %v578_v47, 15 }
  0x4c   :  { %v242_v57 = vshrl.u32 %v226_v48, 9  ;;  %v243_v58 = vshrl.u32 %v227_v49, 9  ;;  %v387_v59 = vxor.u32 %v371_v51, %v355_v31  ;;  %v595_v60 = vshrl.u32 %v579_v52, 15 }
  0x4d   :  { %v1358_v61 = vmul.f32 0.034641016, %v1164_v53  ;;  %v1360_v27 = vmul.f32 0.034641016, %v1165_v55  ;;  %v402_v62 = vmul.u32 2221713035, %v386_v56  ;;  %v610_v36 = vxor.u32 %v594_v54, %v578_v47 }
  0x4e   :  { %v258_v0 = vor.u32 1065353216, %v242_v57  ;;  %v259_v1 = vor.u32 1065353216, %v243_v58  ;;  %v403_v2 = vmul.u32 2221713035, %v387_v59  ;;  %v611_v3 = vxor.u32 %v595_v60, %v579_v52 }
  0x4f   :  { %v418_v6 = vshrl.u32 %v402_v62, 16  ;;  %v626_v7 = vmul.u32 2221713035, %v610_v36  ;;  %v755_v8 = vadd.s32 181057748, %v1342_v45  ;;  %v770_v32 = vshrl.u32 %v754_v22, 16 }
  0x50   :  { %v1106_v10 = vadd.f32 -1.0, %v258_v0  ;;  %v1107_v33 = vadd.f32 -1.0, %v259_v1  ;;  %v419_v41 = vshrl.u32 %v403_v2, 16  ;;  %v627_v14 = vmul.u32 2221713035, %v611_v3 }
  0x51   :  { %v434_v11 = vxor.u32 %v418_v6, %v402_v62  ;;  %v642_v42 = vshrl.u32 %v626_v7, 16  ;;  %v771_v13 = vshrl.u32 %v755_v8, 16  ;;  %v786_v28 = vxor.u32 %v770_v32, %v754_v22 }
  0x52   :  { %v435_v18 = vxor.u32 %v419_v41, %v403_v2  ;;  %v643_v12 = vshrl.u32 %v627_v14, 16  ;;  %v60_v15 = vmul.u32 2654435761, %v1287_v37  ;;  %v61_v16 = vmul.u32 2654435761, %v1310_v46 }
  0x53   :  { %v450_v17 = vshrl.u32 %v434_v11, 9  ;;  %v658_v19 = vxor.u32 %v642_v42, %v626_v7  ;;  %v787_v21 = vxor.u32 %v771_v13, %v755_v8  ;;  %v802_v23 = vmul.u32 2146121005, %v786_v28 }
  0x54   :  { %v451_v45 = vshrl.u32 %v435_v18, 9  ;;  %v659_v24 = vxor.u32 %v643_v12, %v627_v14  ;;  %v78_v25 = vadd.s32 %v1264_v20, %v60_v15  ;;  %v1367_v26 = vadd.s32 %v1264_v20, %v61_v16 }
  0x55   :  { %v466_v29 = vor.u32 1065353216, %v450_v17  ;;  %v674_v30 = vshrl.u32 %v658_v19, 9  ;;  %v803_v22 = vmul.u32 2146121005, %v787_v21  ;;  %v818_v31 = vshrl.u32 %v802_v23, 15 }
  0x56   :  { %v467_v34 = vor.u32 1065353216, %v451_v45  ;;  %v675_v35 = vshrl.u32 %v659_v24, 9  ;;  %v94_v37 = vadd.s32 3266489909, %v78_v25  ;;  %v95_v46 = vadd.s32 3266489909, %v1367_v26 }
  0x57   :  { %v1122_v39 = vadd.f32 -1.0, %v466_v29  ;;  %v690_v40 = vor.u32 1065353216, %v674_v30  ;;  %v819_v47 = vshrl.u32 %v803_v22, 15  ;;  %v834_v48 = vxor.u32 %v818_v31, %v802_v23 }
  0x58   :  { %v1123_v49 = vadd.f32 -1.0, %v467_v34  ;;  %v691_v51 = vor.u32 1065353216, %v675_v35  ;;  %v110_v52 = vshrl.u32 %v94_v37, 16  ;;  %v111_v53 = vshrl.u32 %v95_v46, 16 }
  0x59   :  { %v514_v55 = vadd.f32 %v1122_v39, %v1106_v10  ;;  %v1138_v56 = vadd.f32 -1.0, %v690_v40  ;;  %v835_v54 = vxor.u32 %v819_v47, %v803_v22  ;;  %v850_v57 = vmul.u32 2221713035, %v834_v48 }
  0x5a   :  { %v515_v58 = vadd.f32 %v1123_v49, %v1107_v33  ;;  %v1139_v59 = vadd.f32 -1.0, %v691_v51  ;;  %v126_v60 = vxor.u32 %v110_v52, %v94_v37  ;;  %v127_v62 = vxor.u32 %v111_v53, %v95_v46 }
  0x5b   :  { %v738_v36 = vadd.f32 %v1138_v56, %v514_v55  ;;  %v851_v0 = vmul.u32 2221713035, %v835_v54  ;;  %v866_v1 = vshrl.u32 %v850_v57, 16  ;;  %v302_v2 = vadd.s32 2238012522, %v78_v25 }
  0x5c   :  { %v739_v3 = vadd.f32 %v1139_v59, %v515_v58  ;;  %v142_v6 = vmul.u32 2146121005, %v126_v60  ;;  %v143_v7 = vmul.u32 2146121005, %v127_v62  ;;  %v303_v8 = vadd.s32 2238012522, %v1367_v26 }
  0x5d   :  { %v867_v32 = vshrl.u32 %v851_v0, 16  ;;  %v882_v41 = vxor.u32 %v866_v1, %v850_v57  ;;  %v318_v14 = vshrl.u32 %v302_v2, 16  ;;  %v526_v10 = vadd.s32 1209535135, %v78_v25 }
  0x5e   :  { %v158_v11 = vshrl.u32 %v142_v6, 15  ;;  %v159_v42 = vshrl.u32 %v143_v7, 15  ;;  %v319_v13 = vshrl.u32 %v303_v8, 16  ;;  %v527_v33 = vadd.s32 1209535135, %v1367_v26 }
  0x5f   :  { %v883_v28 = vxor.u32 %v867_v32, %v851_v0  ;;  %v898_v18 = vshrl.u32 %v882_v41, 9  ;;  %v334_v12 = vxor.u32 %v318_v14, %v302_v2  ;;  %v542_v15 = vshrl.u32 %v526_v10, 16 }
  0x60   :  { %v174_v16 = vxor.u32 %v158_v11, %v142_v6  ;;  %v175_v17 = vxor.u32 %v159_v42, %v143_v7  ;;  %v335_v19 = vxor.u32 %v319_v13, %v303_v8  ;;  %v543_v21 = vshrl.u32 %v527_v33, 16 }
  0x61   :  { %v899_v23 = vshrl.u32 %v883_v28, 9  ;;  %v914_v45 = vor.u32 1065353216, %v898_v18  ;;  %v350_v24 = vmul.u32 2146121005, %v334_v12  ;;  %v558_v29 = vxor.u32 %v542_v15, %v526_v10 }
  0x62   :  { %v190_v30 = vmul.u32 2221713035, %v174_v16  ;;  %v191_v22 = vmul.u32 2221713035, %v175_v17  ;;  %v559_v31 = vxor.u32 %v543_v21, %v527_v33  ;;  %v750_v34 = vadd.s32 181057748, %v78_v25 }
  0x63   :  { %v915_v35 = vor.u32 1065353216, %v899_v23  ;;  %v1154_v37 = vadd.f32 -1.0, %v914_v45  ;;  %v351_v46 = vmul.u32 2146121005, %v335_v19  ;;  %v366_v39 = vshrl.u32 %v350_v24, 15 }
  0x64   :  { %v206_v40 = vshrl.u32 %v190_v30, 16  ;;  %v207_v47 = vshrl.u32 %v191_v22, 16  ;;  %v574_v48 = vmul.u32 2146121005, %v558_v29  ;;  %v575_v49 = vmul.u32 2146121005, %v559_v31 }
  0x65   :  { %v1155_v51 = vadd.f32 -1.0, %v915_v35  ;;  %v962_v52 = vadd.f32 %v1154_v37, %v738_v36  ;;  %v367_v53 = vshrl.u32 %v351_v46, 15  ;;  %v382_v55 = vxor.u32 %v366_v39, %v350_v24 }
  0x66   :  { %v222_v56 = vxor.u32 %v206_v40, %v190_v30  ;;  %v223_v54 = vxor.u32 %v207_v47, %v191_v22  ;;  %v590_v57 = vshrl.u32 %v574_v48, 15  ;;  %v591_v58 = vshrl.u32 %v575_v49, 15 }
  0x67   :  { %v963_v59 = vadd.f32 %v1155_v51, %v739_v3  ;;  %v1170_v60 = vadd.f32 -2.0, %v962_v52  ;;  %v383_v62 = vxor.u32 %v367_v53, %v351_v46  ;;  %v398_v25 = vmul.u32 2221713035, %v382_v55 }
  0x68   :  { %v238_v0 = vshrl.u32 %v222_v56, 9  ;;  %v239_v1 = vshrl.u32 %v223_v54, 9  ;;  %v606_v2 = vxor.u32 %v590_v57, %v574_v48  ;;  %v607_v6 = vxor.u32 %v591_v58, %v575_v49 }
  0x69   :  { %v1171_v7 = vadd.f32 -2.0, %v963_v59  ;;  %v1372_v8 = vmul.f32 0.034641016, %v1170_v60  ;;  %v399_v32 = vmul.u32 2221713035, %v383_v62  ;;  %v414_v41 = vshrl.u32 %v398_v25, 16 }
  0x6a   :  { %v254_v36 = vor.u32 1065353216, %v238_v0  ;;  %v255_v14 = vor.u32 1065353216, %v239_v1  ;;  %v622_v10 = vmul.u32 2221713035, %v606_v2  ;;  %v623_v11 = vmul.u32 2221713035, %v607_v6 }
  0x6b   :  { %v1374_v42 = vmul.f32 0.034641016, %v1171_v7  ;;  %v415_v13 = vshrl.u32 %v399_v32, 16  ;;  %v430_v3 = vxor.u32 %v414_v41, %v398_v25  ;;  %v751_v33 = vadd.s32 181057748, %v1367_v26 }
  0x6c   :  { %v1102_v28 = vadd.f32 -1.0, %v254_v36  ;;  %v1103_v18 = vadd.f32 -1.0, %v255_v14  ;;  %v638_v12 = vshrl.u32 %v622_v10, 16  ;;  %v639_v15 = vshrl.u32 %v623_v11, 16 }
  0x6d   :  { %v431_v16 = vxor.u32 %v415_v13, %v399_v32  ;;  %v446_v17 = vshrl.u32 %v430_v3, 9  ;;  %v766_v19 = vshrl.u32 %v750_v34, 16  ;;  %v767_v21 = vshrl.u32 %v751_v33, 16 }
  0x6e   :  { %v654_v23 = vxor.u32 %v638_v12, %v622_v10  ;;  %v655_v45 = vxor.u32 %v639_v15, %v623_v11  ;;  %v68_v24 = vmul.u32 2654435761, %v1315_v50  ;;  %v69_v29 = vmul.u32 2654435761, %v1352_v63 }
  0x6f   :  { %v447_v30 = vshrl.u32 %v431_v16, 9  ;;  %v462_v22 = vor.u32 1065353216, %v446_v17  ;;  %v782_v31 = vxor.u32 %v766_v19, %v750_v34  ;;  %v783_v35 = vxor.u32 %v767_v21, %v751_v33 }
  0x70   :  { %v670_v37 = vshrl.u32 %v654_v23, 9  ;;  %v671_v26 = vshrl.u32 %v655_v45, 9  ;;  %v1380_v46 = vadd.s32 %v1264_v20, %v68_v24  ;;  %v1383_v39 = vadd.s32 %v1264_v20, %v69_v29 }
  0x71   :  { %v463_v40 = vor.u32 1065353216, %v447_v30  ;;  %v1118_v47 = vadd.f32 -1.0, %v462_v22  ;;  %v798_v48 = vmul.u32 2146121005, %v782_v31  ;;  %v799_v49 = vmul.u32 2146121005, %v783_v35 }
  0x72   :  { %v686_v51 = vor.u32 1065353216, %v670_v37  ;;  %v687_v50 = vor.u32 1065353216, %v671_v26  ;;  %v102_v63 = vadd.s32 3266489909, %v1380_v46  ;;  %v103_v52 = vadd.s32 3266489909, %v1383_v39 }
  0x73   :  { %v1119_v34 = vadd.f32 -1.0, %v463_v40  ;;  %v510_v53 = vadd.f32 %v1118_v47, %v1102_v28  ;;  %v814_v55 = vshrl.u32 %v798_v48, 15  ;;  %v815_v56 = vshrl.u32 %v799_v49, 15 }
  0x74   :  { %v1134_v54 = vadd.f32 -1.0, %v686_v51  ;;  %v1135_v57 = vadd.f32 -1.0, %v687_v50  ;;  %v118_v58 = vshrl.u32 %v102_v63, 16  ;;  %v119_v59 = vshrl.u32 %v103_v52, 16 }
  0x75   :  { %v511_v60 = vadd.f32 %v1119_v34, %v1103_v18  ;;  %v830_v62 = vxor.u32 %v814_v55, %v798_v48  ;;  %v831_v25 = vxor.u32 %v815_v56, %v799_v49  ;;  %v310_v0 = vadd.s32 2238012522, %v1380_v46 }
  0x76   :  { %v734_v1 = vadd.f32 %v1134_v54, %v510_v53  ;;  %v134_v2 = vxor.u32 %v118_v58, %v102_v63  ;;  %v135_v6 = vxor.u32 %v119_v59, %v103_v52  ;;  %v311_v7 = vadd.s32 2238012522, %v1383_v39 }
  0x77   :  { %v735_v32 = vadd.f32 %v1135_v57, %v511_v60  ;;  %v846_v41 = vmul.u32 2221713035, %v830_v62  ;;  %v847_v36 = vmul.u32 2221713035, %v831_v25  ;;  %v326_v14 = vshrl.u32 %v310_v0, 16 }
  0x78   :  { %v150_v10 = vmul.u32 2146121005, %v134_v2  ;;  %v151_v11 = vmul.u32 2146121005, %v135_v6  ;;  %v327_v13 = vshrl.u32 %v311_v7, 16  ;;  %v1390_v3 = vadd.s32 56, %v1233_v4 }
  0x79   :  { %v862_v33 = vshrl.u32 %v846_v41, 16  ;;  %v863_v28 = vshrl.u32 %v847_v36, 16  ;;  %v342_v18 = vxor.u32 %v326_v14, %v310_v0  ;;  %v534_v12 = vadd.s32 1209535135, %v1380_v46 }
  0x7a   :  { %v166_v15 = vshrl.u32 %v150_v10, 15  ;;  %v167_v16 = vshrl.u32 %v151_v11, 15  ;;  %v343_v17 = vxor.u32 %v327_v13, %v311_v7  ;;  %v535_v19 = vadd.s32 1209535135, %v1383_v39 }
  0x7b   :  { %v878_v21 = vxor.u32 %v862_v33, %v846_v41  ;;  %v879_v23 = vxor.u32 %v863_v28, %v847_v36  ;;  %v358_v45 = vmul.u32 2146121005, %v342_v18  ;;  %v550_v24 = vshrl.u32 %v534_v12, 16 }
  0x7c   :  { %v182_v29 = vxor.u32 %v166_v15, %v150_v10  ;;  %v183_v30 = vxor.u32 %v167_v16, %v151_v11  ;;  %v359_v22 = vmul.u32 2146121005, %v343_v17  ;;  %v551_v31 = vshrl.u32 %v535_v19, 16 }
  0x7d   :  { %v1025_v35 = vpop.permute.xlu1 %1024  ;;  %v1015_v37 = vpop.permute.xlu0 %1014  ;;  %v894_v26 = vshrl.u32 %v878_v21, 9  ;;  %v895_v40 = vshrl.u32 %v879_v23, 9  ;;  %v374_v47 = vshrl.u32 %v358_v45, 15  ;;  %v566_v48 = vxor.u32 %v550_v24, %v534_v12 }
  0x7e   :  { %v1056_v49 = vadd.f32 %v1025_v35, %v1335_v43  ;;  %v1057_v51 = vadd.f32 %v1025_v35, %v1337_v44  ;;  %v1052_v50 = vadd.f32 %v1015_v37, %v1358_v61  ;;  %v1053_v63 = vadd.f32 %v1015_v37, %v1360_v27 }
  0x7f   :  { %v910_v52 = vor.u32 1065353216, %v894_v26  ;;  %v911_v34 = vor.u32 1065353216, %v895_v40  ;;  %v198_v53 = vmul.u32 2221713035, %v182_v29  ;;  %v199_v55 = vmul.u32 2221713035, %v183_v30 }
  0x80   :  { %1072 = vst [vmem:[#allocation4 + $0x20] sm:$0xff] %v1056_v49  ;;  %1073 = vst [vmem:[#allocation4 + $0x28] sm:$0xff] %v1057_v51  ;;  %v375_v56 = vshrl.u32 %v359_v22, 15  ;;  %v390_v54 = vxor.u32 %v374_v47, %v358_v45  ;;  %v567_v57 = vxor.u32 %v551_v31, %v535_v19  ;;  %v582_v58 = vmul.u32 2146121005, %v566_v48 }
  0x81   :  { %1068 = vst [vmem:[#allocation4] sm:$0xff] %v1052_v50  ;;  %1069 = vst [vmem:[#allocation4 + $0x8] sm:$0xff] %v1053_v63  ;;  %v1030_v59 = vpop.permute.xlu1 %1029  ;;  %v1150_v43 = vadd.f32 -1.0, %v910_v52  ;;  %v1151_v60 = vadd.f32 -1.0, %v911_v34  ;;  %v214_v44 = vshrl.u32 %v198_v53, 16  ;;  %v215_v62 = vshrl.u32 %v199_v55, 16  ;;  %v1020_v12 = vpop.permute.xlu0 %1019 }
  0x82   :  { %v1058_v61 = vadd.f32 %v1030_v59, %v1372_v8  ;;  %v1059_v27 = vadd.f32 %v1030_v59, %v1374_v42  ;;  %v391_v25 = vxor.u32 %v375_v56, %v359_v22  ;;  %v406_v0 = vmul.u32 2221713035, %v390_v54 }
  0x83   :  { %v958_v2 = vadd.f32 %v1150_v43, %v734_v1  ;;  %v959_v6 = vadd.f32 %v1151_v60, %v735_v32  ;;  %v230_v7 = vxor.u32 %v214_v44, %v198_v53  ;;  %v231_v41 = vxor.u32 %v215_v62, %v199_v55 }
  0x84   :  { %1074 = vst [vmem:[#allocation4 + $0x30] sm:$0xff] %v1058_v61  ;;  %1075 = vst [vmem:[#allocation4 + $0x38] sm:$0xff] %v1059_v27  ;;  %v407_v36 = vmul.u32 2221713035, %v391_v25  ;;  %v422_v14 = vshrl.u32 %v406_v0, 16  ;;  %v598_v11 = vshrl.u32 %v582_v58, 15 }
  0x85   :  { %v583_v10 = vmul.u32 2146121005, %v567_v57  ;;  %v1166_v13 = vadd.f32 -2.0, %v958_v2  ;;  %v1167_v33 = vadd.f32 -2.0, %v959_v6  ;;  %v246_v28 = vshrl.u32 %v230_v7, 9 }
  0x86   :  { %v247_v18 = vshrl.u32 %v231_v41, 9  ;;  %v423_v8 = vshrl.u32 %v407_v36, 16  ;;  %v438_v15 = vxor.u32 %v422_v14, %v406_v0  ;;  %v614_v16 = vxor.u32 %v598_v11, %v582_v58 }
  0x87   :  { %v599_v42 = vshrl.u32 %v583_v10, 15  ;;  %v990_v17 = vmul.f32 0.034641016, %v1166_v13  ;;  %v991_v1 = vmul.f32 0.034641016, %v1167_v33  ;;  %v262_v32 = vor.u32 1065353216, %v246_v28 }
  0x88   :  { %v263_v19 = vor.u32 1065353216, %v247_v18  ;;  %v439_v21 = vxor.u32 %v423_v8, %v407_v36  ;;  %v454_v23 = vshrl.u32 %v438_v15, 9  ;;  %v630_v24 = vmul.u32 2221713035, %v614_v16 }
  0x89   :  { %v615_v45 = vxor.u32 %v599_v42, %v583_v10  ;;  %v1054_v29 = vadd.f32 %v1020_v12, %v990_v17  ;;  %v1055_v30 = vadd.f32 %v1020_v12, %v991_v1  ;;  %v1110_v22 = vadd.f32 -1.0, %v262_v32 }
  0x8a   :  { %v1111_v31 = vadd.f32 -1.0, %v263_v19  ;;  %v455_v35 = vshrl.u32 %v439_v21, 9  ;;  %v470_v37 = vor.u32 1065353216, %v454_v23  ;;  %v646_v40 = vshrl.u32 %v630_v24, 16 }
  0x8b   :  { %v631_v26 = vmul.u32 2221713035, %v615_v45  ;;  %1070 = vst [vmem:[#allocation4 + $0x10] sm:$0xff] %v1054_v29  ;;  %1071 = vst [vmem:[#allocation4 + $0x18] sm:$0xff] %v1055_v30  ;;  %v758_v47 = vadd.s32 181057748, %v1380_v46 }
  0x8c   :  { %v759_v48 = vadd.s32 181057748, %v1383_v39  ;;  %v37_v49 = vmul.u32 256, %v1290_v38  ;;  %v40_v51 = vmul.u32 256, %v1390_v3  ;;  %v471_v50 = vor.u32 1065353216, %v455_v35 }
  0x8d   :  { %v1126_v63 = vadd.f32 -1.0, %v470_v37  ;;  %v647_v52 = vshrl.u32 %v631_v26, 16  ;;  %v662_v34 = vxor.u32 %v646_v40, %v630_v24  ;;  %v774_v53 = vshrl.u32 %v758_v47, 16 }
  0x8e   :  { %v775_v55 = vshrl.u32 %v759_v48, 16  ;;  %v49_v56 = vadd.s32 %v37_v49, %v1235_v5  ;;  %v50_v54 = vadd.s32 %v37_v49, %v1248_v9  ;;  %v1127_v57 = vadd.f32 -1.0, %v471_v50 }
  0x8f   :  { %v518_v58 = vadd.f32 %v1126_v63, %v1110_v22  ;;  %v663_v59 = vxor.u32 %v647_v52, %v631_v26  ;;  %v678_v46 = vshrl.u32 %v662_v34, 9  ;;  %v790_v43 = vxor.u32 %v774_v53, %v758_v47 }
  0x90   :  { %v791_v39 = vxor.u32 %v775_v55, %v759_v48  ;;  %v66_v60 = vmul.u32 2654435761, %v49_v56  ;;  %v67_v38 = vmul.u32 2654435761, %v50_v54  ;;  %v519_v44 = vadd.f32 %v1127_v57, %v1111_v31 }
  0x91   :  { %v679_v3 = vshrl.u32 %v663_v59, 9  ;;  %v694_v62 = vor.u32 1065353216, %v678_v46  ;;  %v1407_v61 = vadd.s32 %v40_v51, %v1235_v5  ;;  %v806_v27 = vmul.u32 2146121005, %v790_v43 }
  0x92   :  { %v807_v25 = vmul.u32 2146121005, %v791_v39  ;;  %v1410_v0 = vadd.s32 %v1264_v20, %v66_v60  ;;  %v1413_v2 = vadd.s32 %v1264_v20, %v67_v38  ;;  %v1416_v41 = vadd.s32 %v40_v51, %v1248_v9 }
  0x93   :  { %v695_v6 = vor.u32 1065353216, %v679_v3  ;;  %v1142_v7 = vadd.f32 -1.0, %v694_v62  ;;  %v72_v36 = vmul.u32 2654435761, %v1407_v61  ;;  %v822_v14 = vshrl.u32 %v806_v27, 15 }
  0x94   :  { %v823_v10 = vshrl.u32 %v807_v25, 15  ;;  %v100_v11 = vadd.s32 3266489909, %v1410_v0  ;;  %v101_v13 = vadd.s32 3266489909, %v1413_v2 }
  0x95   :  { %v1143_v33 = vadd.f32 -1.0, %v695_v6  ;;  %v742_v28 = vadd.f32 %v1142_v7, %v518_v58  ;;  %v308_v18 = vadd.s32 2238012522, %v1410_v0  ;;  %v309_v12 = vadd.s32 2238012522, %v1413_v2 }
  0x96   :  { %v838_v8 = vxor.u32 %v822_v14, %v806_v27  ;;  %v839_v15 = vxor.u32 %v823_v10, %v807_v25  ;;  %v116_v42 = vshrl.u32 %v100_v11, 16  ;;  %v117_v16 = vshrl.u32 %v101_v13, 16 }
  0x97   :  { %v743_v17 = vadd.f32 %v1143_v33, %v519_v44  ;;  %v324_v1 = vshrl.u32 %v308_v18, 16  ;;  %v325_v32 = vshrl.u32 %v309_v12, 16  ;;  %v532_v19 = vadd.s32 1209535135, %v1410_v0 }
  0x98   :  { %v854_v21 = vmul.u32 2221713035, %v838_v8  ;;  %v855_v23 = vmul.u32 2221713035, %v839_v15  ;;  %v132_v45 = vxor.u32 %v116_v42, %v100_v11  ;;  %v133_v24 = vxor.u32 %v117_v16, %v101_v13 }
  0x99   :  { %v340_v29 = vxor.u32 %v324_v1, %v308_v18  ;;  %v341_v30 = vxor.u32 %v325_v32, %v309_v12  ;;  %v533_v22 = vadd.s32 1209535135, %v1413_v2  ;;  %v548_v31 = vshrl.u32 %v532_v19, 16 }
  0x9a   :  { %v870_v35 = vshrl.u32 %v854_v21, 16  ;;  %v871_v37 = vshrl.u32 %v855_v23, 16  ;;  %v148_v26 = vmul.u32 2146121005, %v132_v45  ;;  %v149_v40 = vmul.u32 2146121005, %v133_v24 }
  0x9b   :  { %v356_v47 = vmul.u32 2146121005, %v340_v29  ;;  %v357_v48 = vmul.u32 2146121005, %v341_v30  ;;  %v549_v49 = vshrl.u32 %v533_v22, 16  ;;  %v564_v51 = vxor.u32 %v548_v31, %v532_v19  ;;  %v1040_v31 = vpop.permute.xlu1 %1039 }
  0x9c   :  { %v886_v50 = vxor.u32 %v870_v35, %v854_v21  ;;  %v887_v63 = vxor.u32 %v871_v37, %v855_v23  ;;  %v164_v52 = vshrl.u32 %v148_v26, 15  ;;  %v165_v34 = vshrl.u32 %v149_v40, 15 }
  0x9d   :  { %v372_v53 = vshrl.u32 %v356_v47, 15  ;;  %v373_v55 = vshrl.u32 %v357_v48, 15  ;;  %v565_v56 = vxor.u32 %v549_v49, %v533_v22  ;;  %v580_v54 = vmul.u32 2146121005, %v564_v51 }
  0x9e   :  { %v902_v57 = vshrl.u32 %v886_v50, 9  ;;  %v903_v58 = vshrl.u32 %v887_v63, 9  ;;  %v180_v59 = vxor.u32 %v164_v52, %v148_v26  ;;  %v181_v46 = vxor.u32 %v165_v34, %v149_v40 }
  0x9f   :  { %v388_v43 = vxor.u32 %v372_v53, %v356_v47  ;;  %v389_v39 = vxor.u32 %v373_v55, %v357_v48  ;;  %v581_v60 = vmul.u32 2146121005, %v565_v56  ;;  %v596_v38 = vshrl.u32 %v580_v54, 15 }
  0xa0   :  { %v918_v44 = vor.u32 1065353216, %v902_v57  ;;  %v919_v3 = vor.u32 1065353216, %v903_v58  ;;  %v196_v62 = vmul.u32 2221713035, %v180_v59  ;;  %v197_v27 = vmul.u32 2221713035, %v181_v46 }
  0xa1   :  { %v404_v25 = vmul.u32 2221713035, %v388_v43  ;;  %v405_v6 = vmul.u32 2221713035, %v389_v39  ;;  %v597_v7 = vshrl.u32 %v581_v60, 15  ;;  %v612_v14 = vxor.u32 %v596_v38, %v580_v54 }
  0xa2   :  { %v1158_v10 = vadd.f32 -1.0, %v918_v44  ;;  %v1159_v11 = vadd.f32 -1.0, %v919_v3  ;;  %v212_v13 = vshrl.u32 %v196_v62, 16  ;;  %v213_v33 = vshrl.u32 %v197_v27, 16 }
  0xa3   :  { %v420_v18 = vshrl.u32 %v404_v25, 16  ;;  %v421_v12 = vshrl.u32 %v405_v6, 16  ;;  %v613_v8 = vxor.u32 %v597_v7, %v581_v60  ;;  %v628_v15 = vmul.u32 2221713035, %v612_v14 }
  0xa4   :  { %v966_v42 = vadd.f32 %v1158_v10, %v742_v28  ;;  %v967_v16 = vadd.f32 %v1159_v11, %v743_v17  ;;  %v228_v1 = vxor.u32 %v212_v13, %v196_v62  ;;  %v229_v32 = vxor.u32 %v213_v33, %v197_v27 }
  0xa5   :  { %v436_v19 = vxor.u32 %v420_v18, %v404_v25  ;;  %v437_v21 = vxor.u32 %v421_v12, %v405_v6  ;;  %v629_v23 = vmul.u32 2221713035, %v613_v8  ;;  %v644_v45 = vshrl.u32 %v628_v15, 16 }
  0xa6   :  { %v1174_v24 = vadd.f32 -2.0, %v966_v42  ;;  %v1175_v29 = vadd.f32 -2.0, %v967_v16  ;;  %v244_v30 = vshrl.u32 %v228_v1, 9  ;;  %v245_v22 = vshrl.u32 %v229_v32, 9 }
  0xa7   :  { %v452_v35 = vshrl.u32 %v436_v19, 9  ;;  %v453_v37 = vshrl.u32 %v437_v21, 9  ;;  %v645_v26 = vshrl.u32 %v629_v23, 16  ;;  %v660_v40 = vxor.u32 %v644_v45, %v628_v15 }
  0xa8   :  { %v998_v47 = vmul.f32 0.034641016, %v1174_v24  ;;  %v999_v48 = vmul.f32 0.034641016, %v1175_v29  ;;  %v260_v49 = vor.u32 1065353216, %v244_v30  ;;  %v261_v28 = vor.u32 1065353216, %v245_v22 }
  0xa9   :  { %v468_v17 = vor.u32 1065353216, %v452_v35  ;;  %v469_v51 = vor.u32 1065353216, %v453_v37  ;;  %v661_v50 = vxor.u32 %v645_v26, %v629_v23  ;;  %v676_v63 = vshrl.u32 %v660_v40, 9 }
  0xaa   :  { %v1062_v52 = vadd.f32 %v1040_v31, %v998_v47  ;;  %v1063_v34 = vadd.f32 %v1040_v31, %v999_v48  ;;  %v1108_v53 = vadd.f32 -1.0, %v260_v49  ;;  %v1109_v55 = vadd.f32 -1.0, %v261_v28 }
  0xab   :  { %v1124_v56 = vadd.f32 -1.0, %v468_v17  ;;  %v1125_v54 = vadd.f32 -1.0, %v469_v51  ;;  %v677_v57 = vshrl.u32 %v661_v50, 9  ;;  %v756_v58 = vadd.s32 181057748, %v1410_v0 }
  0xac   :  { %1078 = vst [vmem:[#allocation4 + $0x50] sm:$0xff] %v1062_v52  ;;  %1079 = vst [vmem:[#allocation4 + $0x58] sm:$0xff] %v1063_v34  ;;  %v757_v59 = vadd.s32 181057748, %v1413_v2  ;;  %v73_v46 = vmul.u32 2654435761, %v1416_v41  ;;  %v1431_v43 = vadd.s32 %v1264_v20, %v72_v36 }
  0xad   :  { %v1433_v39 = vadd.f32 %v1124_v56, %v1108_v53  ;;  %v692_v60 = vor.u32 1065353216, %v676_v63  ;;  %v772_v38 = vshrl.u32 %v756_v58, 16  ;;  %v1439_v0 = vadd.f32 %v1125_v54, %v1109_v55 }
  0xae   :  { %v773_v44 = vshrl.u32 %v757_v59, 16  ;;  %v1436_v3 = vadd.s32 %v1264_v20, %v73_v46  ;;  %v106_v62 = vadd.s32 3266489909, %v1431_v43  ;;  %v693_v2 = vor.u32 1065353216, %v677_v57 }
  0xaf   :  { %v314_v41 = vadd.s32 2238012522, %v1431_v43  ;;  %v538_v61 = vadd.s32 1209535135, %v1431_v43  ;;  %v788_v27 = vxor.u32 %v772_v38, %v756_v58  ;;  %v1140_v7 = vadd.f32 -1.0, %v692_v60 }
  0xb0   :  { %v789_v36 = vxor.u32 %v773_v44, %v757_v59  ;;  %v107_v25 = vadd.s32 3266489909, %v1436_v3  ;;  %v122_v6 = vshrl.u32 %v106_v62, 16  ;;  %v315_v14 = vadd.s32 2238012522, %v1436_v3 }
  0xb1   :  { %v330_v10 = vshrl.u32 %v314_v41, 16  ;;  %v539_v11 = vadd.s32 1209535135, %v1436_v3  ;;  %v804_v13 = vmul.u32 2146121005, %v788_v27  ;;  %v554_v42 = vshrl.u32 %v538_v61, 16 }
  0xb2   :  { %v805_v33 = vmul.u32 2146121005, %v789_v36  ;;  %v123_v18 = vshrl.u32 %v107_v25, 16  ;;  %v138_v12 = vxor.u32 %v122_v6, %v106_v62  ;;  %v331_v8 = vshrl.u32 %v315_v14, 16 }
  0xb3   :  { %v346_v15 = vxor.u32 %v330_v10, %v314_v41  ;;  %v555_v16 = vshrl.u32 %v539_v11, 16  ;;  %v820_v1 = vshrl.u32 %v804_v13, 15  ;;  %v570_v24 = vxor.u32 %v554_v42, %v538_v61 }
  0xb4   :  { %v821_v32 = vshrl.u32 %v805_v33, 15  ;;  %v139_v19 = vxor.u32 %v123_v18, %v107_v25  ;;  %v154_v21 = vmul.u32 2146121005, %v138_v12  ;;  %v347_v23 = vxor.u32 %v331_v8, %v315_v14 }
  0xb5   :  { %v362_v45 = vmul.u32 2146121005, %v346_v15  ;;  %v571_v29 = vxor.u32 %v555_v16, %v539_v11  ;;  %v836_v30 = vxor.u32 %v820_v1, %v804_v13  ;;  %v1141_v37 = vadd.f32 -1.0, %v693_v2 }
  0xb6   :  { %v837_v22 = vxor.u32 %v821_v32, %v805_v33  ;;  %v155_v31 = vmul.u32 2146121005, %v139_v19  ;;  %v170_v35 = vshrl.u32 %v154_v21, 15  ;;  %v363_v26 = vmul.u32 2146121005, %v347_v23 }
  0xb7   :  { %v378_v40 = vshrl.u32 %v362_v45, 15  ;;  %v586_v47 = vmul.u32 2146121005, %v570_v24  ;;  %v852_v48 = vmul.u32 2221713035, %v836_v30  ;;  %v740_v33 = vadd.f32 %v1140_v7, %v1433_v39  ;;  %v1035_v7 = vpop.permute.xlu0 %1034 }
  0xb8   :  { %v853_v49 = vmul.u32 2221713035, %v837_v22  ;;  %v171_v28 = vshrl.u32 %v155_v31, 15  ;;  %v186_v17 = vxor.u32 %v170_v35, %v154_v21  ;;  %v379_v51 = vshrl.u32 %v363_v26, 15 }
  0xb9   :  { %v394_v50 = vxor.u32 %v378_v40, %v362_v45  ;;  %v587_v63 = vmul.u32 2146121005, %v571_v29  ;;  %v602_v52 = vshrl.u32 %v586_v47, 15  ;;  %v868_v34 = vshrl.u32 %v852_v48, 16 }
  0xba   :  { %v869_v53 = vshrl.u32 %v853_v49, 16  ;;  %v187_v55 = vxor.u32 %v171_v28, %v155_v31  ;;  %v202_v56 = vmul.u32 2221713035, %v186_v17  ;;  %v395_v54 = vxor.u32 %v379_v51, %v363_v26 }
  0xbb   :  { %v410_v57 = vmul.u32 2221713035, %v394_v50  ;;  %v603_v58 = vshrl.u32 %v587_v63, 15  ;;  %v618_v59 = vxor.u32 %v602_v52, %v586_v47  ;;  %v884_v46 = vxor.u32 %v868_v34, %v852_v48 }
  0xbc   :  { %v885_v60 = vxor.u32 %v869_v53, %v853_v49  ;;  %v203_v38 = vmul.u32 2221713035, %v187_v55  ;;  %v218_v44 = vshrl.u32 %v202_v56, 16  ;;  %v411_v62 = vmul.u32 2221713035, %v395_v54 }
  0xbd   :  { %v426_v2 = vshrl.u32 %v410_v57, 16  ;;  %v619_v41 = vxor.u32 %v603_v58, %v587_v63  ;;  %v634_v61 = vmul.u32 2221713035, %v618_v59  ;;  %v900_v27 = vshrl.u32 %v884_v46, 9 }
  0xbe   :  { %v901_v36 = vshrl.u32 %v885_v60, 9  ;;  %v219_v25 = vshrl.u32 %v203_v38, 16  ;;  %v234_v6 = vxor.u32 %v218_v44, %v202_v56  ;;  %v427_v14 = vshrl.u32 %v411_v62, 16 }
  0xbf   :  { %v442_v10 = vxor.u32 %v426_v2, %v410_v57  ;;  %v635_v11 = vmul.u32 2221713035, %v619_v41  ;;  %v650_v13 = vshrl.u32 %v634_v61, 16  ;;  %v741_v18 = vadd.f32 %v1141_v37, %v1439_v0 }
  0xc0   :  { %v916_v12 = vor.u32 1065353216, %v900_v27  ;;  %v917_v8 = vor.u32 1065353216, %v901_v36  ;;  %v235_v15 = vxor.u32 %v219_v25, %v203_v38  ;;  %v443_v42 = vxor.u32 %v427_v14, %v411_v62 }
  0xc1   :  { %v651_v16 = vshrl.u32 %v635_v11, 16  ;;  %v250_v19 = vshrl.u32 %v234_v6, 9  ;;  %v458_v21 = vshrl.u32 %v442_v10, 9  ;;  %v666_v23 = vxor.u32 %v650_v13, %v634_v61 }
  0xc2   :  { %v1156_v1 = vadd.f32 -1.0, %v916_v12  ;;  %v1157_v32 = vadd.f32 -1.0, %v917_v8  ;;  %v251_v29 = vshrl.u32 %v235_v15, 9  ;;  %v459_v30 = vshrl.u32 %v443_v42, 9 }
  0xc3   :  { %v667_v22 = vxor.u32 %v651_v16, %v635_v11  ;;  %v762_v39 = vadd.s32 181057748, %v1431_v43  ;;  %v19_v0 = vadd.s32 48, %v1233_v4  ;;  %v266_v37 = vor.u32 1065353216, %v250_v19 }
  0xc4   :  { %v964_v45 = vadd.f32 %v1156_v1, %v740_v33  ;;  %v965_v24 = vadd.f32 %v1157_v32, %v741_v18  ;;  %v474_v26 = vor.u32 1065353216, %v458_v21  ;;  %v682_v40 = vshrl.u32 %v666_v23, 9 }
  0xc5   :  { %v763_v49 = vadd.s32 181057748, %v1436_v3  ;;  %v267_v28 = vor.u32 1065353216, %v251_v29  ;;  %v475_v17 = vor.u32 1065353216, %v459_v30  ;;  %v683_v51 = vshrl.u32 %v667_v22, 9 }
  0xc6   :  { %v1172_v31 = vadd.f32 -2.0, %v964_v45  ;;  %v1173_v35 = vadd.f32 -2.0, %v965_v24  ;;  %v778_v50 = vshrl.u32 %v762_v39, 16  ;;  %v39_v53 = vmul.u32 256, %v19_v0 }
  0xc7   :  { %v779_v34 = vshrl.u32 %v763_v49, 16  ;;  %v1114_v55 = vadd.f32 -1.0, %v266_v37  ;;  %v1130_v43 = vadd.f32 -1.0, %v474_v26  ;;  %v698_v56 = vor.u32 1065353216, %v682_v40 }
  0xc8   :  { %v996_v47 = vmul.f32 0.034641016, %v1172_v31  ;;  %v997_v48 = vmul.f32 0.034641016, %v1173_v35  ;;  %v794_v4 = vxor.u32 %v778_v50, %v762_v39  ;;  %v53_v57 = vadd.s32 %v39_v53, %v1235_v5 }
  0xc9   :  { %v795_v54 = vxor.u32 %v779_v34, %v763_v49  ;;  %v54_v58 = vadd.s32 %v39_v53, %v1248_v9  ;;  %v1115_v3 = vadd.f32 -1.0, %v267_v28  ;;  %v1131_v59 = vadd.f32 -1.0, %v475_v17 }
  0xca   :  { %v1060_v63 = vadd.f32 %v1035_v7, %v996_v47  ;;  %v1061_v52 = vadd.f32 %v1035_v7, %v997_v48  ;;  %v699_v46 = vor.u32 1065353216, %v683_v51  ;;  %v810_v60 = vmul.u32 2146121005, %v794_v4 }
  0xcb   :  { %v811_v38 = vmul.u32 2146121005, %v795_v54  ;;  %v70_v44 = vmul.u32 2654435761, %v53_v57  ;;  %v522_v62 = vadd.f32 %v1130_v43, %v1114_v55  ;;  %v1146_v2 = vadd.f32 -1.0, %v698_v56 }
  0xcc   :  { %1076 = vst [vmem:[#allocation4 + $0x40] sm:$0xff] %v1060_v63  ;;  %1077 = vst [vmem:[#allocation4 + $0x48] sm:$0xff] %v1061_v52  ;;  %v826_v41 = vshrl.u32 %v810_v60, 15  ;;  %v71_v61 = vmul.u32 2654435761, %v54_v58  ;;  %v523_v25 = vadd.f32 %v1131_v59, %v1115_v3  ;;  %v1147_v6 = vadd.f32 -1.0, %v699_v46 }
  0xcd   :  { %v827_v27 = vshrl.u32 %v811_v38, 15  ;;  %v1454_v36 = vadd.s32 %v1264_v20, %v70_v44  ;;  %v746_v33 = vadd.f32 %v1146_v2, %v522_v62 }
  0xce   :  { %v842_v14 = vxor.u32 %v826_v41, %v810_v60  ;;  %v1457_v5 = vadd.s32 %v1264_v20, %v71_v61  ;;  %v747_v26 = vadd.f32 %v1147_v6, %v523_v25 }
  0xcf   :  { %v843_v9 = vxor.u32 %v827_v27, %v811_v38  ;;  %v104_v10 = vadd.s32 3266489909, %v1454_v36  ;;  %v312_v11 = vadd.s32 2238012522, %v1454_v36  ;;  %v536_v13 = vadd.s32 1209535135, %v1454_v36  ;;  %v1050_v27 = vpop.permute.xlu1 %1049 }
  0xd0   :  { %v858_v18 = vmul.u32 2221713035, %v842_v14  ;;  %v105_v12 = vadd.s32 3266489909, %v1457_v5  ;;  %v313_v8 = vadd.s32 2238012522, %v1457_v5 }
  0xd1   :  { %v859_v15 = vmul.u32 2221713035, %v843_v9  ;;  %v120_v42 = vshrl.u32 %v104_v10, 16  ;;  %v328_v16 = vshrl.u32 %v312_v11, 16  ;;  %v537_v1 = vadd.s32 1209535135, %v1457_v5 }
  0xd2   :  { %v874_v20 = vshrl.u32 %v858_v18, 16  ;;  %v121_v32 = vshrl.u32 %v105_v12, 16  ;;  %v329_v19 = vshrl.u32 %v313_v8, 16  ;;  %v552_v21 = vshrl.u32 %v536_v13, 16 }
  0xd3   :  { %v875_v23 = vshrl.u32 %v859_v15, 16  ;;  %v136_v45 = vxor.u32 %v120_v42, %v104_v10  ;;  %v344_v24 = vxor.u32 %v328_v16, %v312_v11  ;;  %v553_v29 = vshrl.u32 %v537_v1, 16 }
  0xd4   :  { %v890_v30 = vxor.u32 %v874_v20, %v858_v18  ;;  %v137_v22 = vxor.u32 %v121_v32, %v105_v12  ;;  %v345_v31 = vxor.u32 %v329_v19, %v313_v8  ;;  %v568_v35 = vxor.u32 %v552_v21, %v536_v13 }
  0xd5   :  { %v891_v39 = vxor.u32 %v875_v23, %v859_v15  ;;  %v152_v0 = vmul.u32 2146121005, %v136_v45  ;;  %v360_v7 = vmul.u32 2146121005, %v344_v24  ;;  %v569_v37 = vxor.u32 %v553_v29, %v537_v1 }
  0xd6   :  { %v906_v40 = vshrl.u32 %v890_v30, 9  ;;  %v153_v47 = vmul.u32 2146121005, %v137_v22  ;;  %v361_v48 = vmul.u32 2146121005, %v345_v31 }
  0xd7   :  { %v907_v49 = vshrl.u32 %v891_v39, 9  ;;  %v168_v28 = vshrl.u32 %v152_v0, 15  ;;  %v376_v17 = vshrl.u32 %v360_v7, 15  ;;  %v584_v51 = vmul.u32 2146121005, %v568_v35 }
  0xd8   :  { %v922_v50 = vor.u32 1065353216, %v906_v40  ;;  %v169_v63 = vshrl.u32 %v153_v47, 15  ;;  %v377_v52 = vshrl.u32 %v361_v48, 15  ;;  %v585_v34 = vmul.u32 2146121005, %v569_v37 }
  0xd9   :  { %v923_v53 = vor.u32 1065353216, %v907_v49  ;;  %v184_v55 = vxor.u32 %v168_v28, %v152_v0  ;;  %v392_v43 = vxor.u32 %v376_v17, %v360_v7  ;;  %v600_v56 = vshrl.u32 %v584_v51, 15 }
  0xda   :  { %v1162_v4 = vadd.f32 -1.0, %v922_v50  ;;  %v185_v54 = vxor.u32 %v169_v63, %v153_v47  ;;  %v393_v57 = vxor.u32 %v377_v52, %v361_v48  ;;  %v601_v58 = vshrl.u32 %v585_v34, 15 }
  0xdb   :  { %v1163_v3 = vadd.f32 -1.0, %v923_v53  ;;  %v200_v46 = vmul.u32 2221713035, %v184_v55  ;;  %v408_v60 = vmul.u32 2221713035, %v392_v43  ;;  %v616_v38 = vxor.u32 %v600_v56, %v584_v51 }
  0xdc   :  { %v970_v59 = vadd.f32 %v1162_v4, %v746_v33  ;;  %v201_v62 = vmul.u32 2221713035, %v185_v54  ;;  %v409_v2 = vmul.u32 2221713035, %v393_v57  ;;  %v617_v41 = vxor.u32 %v601_v58, %v585_v34 }
  0xdd   :  { %v971_v44 = vadd.f32 %v1163_v3, %v747_v26  ;;  %v216_v14 = vshrl.u32 %v200_v46, 16  ;;  %v424_v9 = vshrl.u32 %v408_v60, 16  ;;  %v632_v10 = vmul.u32 2221713035, %v616_v38 }
  0xde   :  { %v1178_v61 = vadd.f32 -2.0, %v970_v59  ;;  %v217_v13 = vshrl.u32 %v201_v62, 16  ;;  %v425_v18 = vshrl.u32 %v409_v2, 16  ;;  %v633_v12 = vmul.u32 2221713035, %v617_v41 }
  0xdf   :  { %v1179_v25 = vadd.f32 -2.0, %v971_v44  ;;  %v232_v15 = vxor.u32 %v216_v14, %v200_v46  ;;  %v440_v42 = vxor.u32 %v424_v9, %v408_v60  ;;  %v648_v16 = vshrl.u32 %v632_v10, 16 }
  0xe0   :  { %v1002_v6 = vmul.f32 0.034641016, %v1178_v61  ;;  %v760_v1 = vadd.s32 181057748, %v1454_v36  ;;  %v233_v20 = vxor.u32 %v217_v13, %v201_v62  ;;  %v441_v32 = vxor.u32 %v425_v18, %v409_v2 }
  0xe1   :  { %v1003_v11 = vmul.f32 0.034641016, %v1179_v25  ;;  %v649_v19 = vshrl.u32 %v633_v12, 16  ;;  %v761_v21 = vadd.s32 181057748, %v1457_v5  ;;  %v248_v24 = vshrl.u32 %v232_v15, 9 }
  0xe2   :  { %v1066_v8 = vadd.f32 %v1050_v27, %v1002_v6  ;;  %v776_v23 = vshrl.u32 %v760_v1, 16  ;;  %v456_v29 = vshrl.u32 %v440_v42, 9  ;;  %v664_v30 = vxor.u32 %v648_v16, %v632_v10  ;;  %v1045_v10 = vpop.permute.xlu0 %1044 }
  0xe3   :  { %v1067_v33 = vadd.f32 %v1050_v27, %v1003_v11  ;;  %v777_v45 = vshrl.u32 %v761_v21, 16  ;;  %v249_v31 = vshrl.u32 %v233_v20, 9  ;;  %v457_v35 = vshrl.u32 %v441_v32, 9 }
  0xe4   :  { %1082 = vst [vmem:[#allocation4 + $0x70] sm:$0xff] %v1066_v8  ;;  %v792_v22 = vxor.u32 %v776_v23, %v760_v1  ;;  %v665_v39 = vxor.u32 %v649_v19, %v633_v12  ;;  %v264_v26 = vor.u32 1065353216, %v248_v24  ;;  %v472_v36 = vor.u32 1065353216, %v456_v29 }
  0xe5   :  { %1083 = vst [vmem:[#allocation4 + $0x78] sm:$0xff] %v1067_v33  ;;  %v793_v0 = vxor.u32 %v777_v45, %v761_v21  ;;  %v680_v40 = vshrl.u32 %v664_v30, 9  ;;  %v265_v48 = vor.u32 1065353216, %v249_v31  ;;  %v473_v49 = vor.u32 1065353216, %v457_v35 }
  0xe6   :  { %v808_v7 = vmul.u32 2146121005, %v792_v22  ;;  %v681_v28 = vshrl.u32 %v665_v39, 9  ;;  %v1112_v50 = vadd.f32 -1.0, %v264_v26  ;;  %v1128_v63 = vadd.f32 -1.0, %v472_v36 }
  0xe7   :  { %v809_v37 = vmul.u32 2146121005, %v793_v0  ;;  %v696_v52 = vor.u32 1065353216, %v680_v40  ;;  %v1113_v53 = vadd.f32 -1.0, %v265_v48  ;;  %v1129_v55 = vadd.f32 -1.0, %v473_v49 }
  0xe8   :  { %v824_v47 = vshrl.u32 %v808_v7, 15  ;;  %v697_v43 = vor.u32 1065353216, %v681_v28  ;;  %v520_v57 = vadd.f32 %v1128_v63, %v1112_v50 }
  0xe9   :  { %v825_v5 = vshrl.u32 %v809_v37, 15  ;;  %v1144_v58 = vadd.f32 -1.0, %v696_v52  ;;  %v521_v59 = vadd.f32 %v1129_v55, %v1113_v53 }
  0xea   :  { %v840_v17 = vxor.u32 %v824_v47, %v808_v7  ;;  %v1145_v46 = vadd.f32 -1.0, %v697_v43 }
  0xeb   :  { %v841_v51 = vxor.u32 %v825_v5, %v809_v37  ;;  %v744_v62 = vadd.f32 %v1144_v58, %v520_v57 }
  0xec   :  { %v856_v34 = vmul.u32 2221713035, %v840_v17  ;;  %v745_v41 = vadd.f32 %v1145_v46, %v521_v59 }
  0xed   :  { %v857_v56 = vmul.u32 2221713035, %v841_v51 }
  0xee   :  { %v872_v4 = vshrl.u32 %v856_v34, 16 }
  0xef   :  { %v873_v54 = vshrl.u32 %v857_v56, 16 }
  0xf0   :  { %v888_v3 = vxor.u32 %v872_v4, %v856_v34 }
  0xf1   :  { %v889_v60 = vxor.u32 %v873_v54, %v857_v56 }
  0xf2   :  { %v904_v38 = vshrl.u32 %v888_v3, 9 }
  0xf3   :  { %v905_v44 = vshrl.u32 %v889_v60, 9 }
  0xf4   :  { %v920_v2 = vor.u32 1065353216, %v904_v38 }
  0xf5   :  { %v921_v61 = vor.u32 1065353216, %v905_v44 }
  0xf6   :  { %v1160_v27 = vadd.f32 -1.0, %v920_v2 }
  0xf7   :  { %v1161_v25 = vadd.f32 -1.0, %v921_v61 }
  0xf8   :  { %v968_v6 = vadd.f32 %v1160_v27, %v744_v62 }
  0xf9   :  { %v969_v14 = vadd.f32 %v1161_v25, %v745_v41 }
  0xfa   :  { %v1176_v9 = vadd.f32 -2.0, %v968_v6 }
  0xfb   :  { %v1177_v11 = vadd.f32 -2.0, %v969_v14 }
  0xfc   :  { %v1000_v13 = vmul.f32 0.034641016, %v1176_v9 }
  0xfd   :  { %v1001_v18 = vmul.f32 0.034641016, %v1177_v11 }
  0xfe   :  { %v1064_v12 = vadd.f32 %v1045_v10, %v1000_v13 }
  0xff   :  { %v1065_v8 = vadd.f32 %v1045_v10, %v1001_v18 }
 0x100   :  { %1080 = vst [vmem:[#allocation4 + $0x60] sm:$0xff] %v1064_v12 }
 0x101   :  { %1081 = vst [vmem:[#allocation4 + $0x68] sm:$0xff] %v1065_v8 }
 0x102   :  { %1197 = shalt.err (!%p1194_p4)
}
 0x103   :  { %s1210_s29 = smov 256   ;;  %s1211_s30 = smov 16  }
 0x104   :  { %1095 = dma.vmem_to_hbm [thread:$0]  %s1090_s27, 2048, %s1472_s2, [#allocation5], %s1210_s29, %s1210_s29, %s1211_s30  }
 0x105   :  { %1206 = dma.done.wait [#allocation5], 2048  }
 0x106   :  { %1207 = vsyncadd [#allocation5], 4294965248 }
 0x107   :  { %1099 = vsyncpa [#allocation5], 1 }

</bundles_post_ra>
